<compile_context>
chip_gen: v5e
topology: v5e:2x2
jax: 0.10.0
libtpu: 0.0.40
codegen_flags: <defaults>
</compile_context>

<pallas_src>
import jax
import jax.numpy as jnp
from jax.experimental import pallas as pl
from jax.experimental.pallas import tpu as pltpu


def _identity_kernel(x_ref, o_ref):
    # Elementwise pass-through of the current (tile_rows, lane) VMEM block.
    o_ref[...] = x_ref[...]


def _tpu_generation():
    try:
        return jax.devices()[0].device_kind.lower()
    except Exception:  # pragma: no cover - defensive, default backend is TPU
        return ""


def _budget_for_device():
    """(target_block_bytes, vmem_limit_bytes, two_tensorcores) per TPU generation."""
    kind = _tpu_generation()
    if "v5" in kind:
        # 16 MiB scoped-VMEM default, 1 TensorCore: stay at 2 MiB blocks.
        return 2 << 20, None, False
    if "v7" in kind:
        # 64 MiB physical / 32 MiB scoped per TC, 2 TensorCores per chip.
        return 4 << 20, None, True
    if "v6" in kind:
        # 128 MiB VMEM; raise the scoped limit to match the 4 MiB tile choice.
        return 4 << 20, 48 << 20, False
    # Unknown generation -> conservative.
    return 2 << 20, None, False


def base_model_forward(x, *, min_pallas_bytes=1 << 20):
    """Pallas 'forward' for BaseModel: identity (the module defines no compute).

    For the alias (input_output_aliases={0: 0}) to actually reuse the HBM buffer,
    the caller must donate `x` (e.g. jax.jit(..., donate_argnums=0)); otherwise
    XLA inserts a defensive copy -- still correct, just more traffic.
    """
    orig_shape = x.shape
    total = 1
    for d in orig_shape:
        total *= int(d)
    itemsize = jnp.dtype(x.dtype).itemsize
    total_bytes = total * itemsize

    # ---- (1) tiny inputs: identity is free; skip the kernel entirely ---------
    if total == 0 or total_bytes < min_pallas_bytes:
        return x

    target_block_bytes, vmem_limit, two_cores = _budget_for_device()

    # Sublane packing per dtype: f32 -> 8 rows/vreg, bf16/f16 -> 16, int8/fp8 -> 32.
    sub = max(8, 32 // max(1, itemsize))
    # On v7x we want enough rows that the grid can have >= 2 steps (2 TensorCores).
    min_rows = 2 * sub if two_cores else sub

    # ---- (2) lane-dense 2-D view ---------------------------------------------
    # Prefer the widest multiple-of-128 divisor of `total` such that one
    # sublane-group tile (sub, lane) fits the block budget and rows >= min_rows.
    pad = 0
    lane = None
    if total % 128 == 0:
        lane_cap = min(total // min_rows, target_block_bytes // (sub * itemsize))
        lane_cap = max(128, (lane_cap // 128) * 128)
        for cand in range(lane_cap, 127, -128):
            if total % cand == 0:
                lane = cand
                break
    if lane is None:
        # Odd element count: pad the flat length to a lane multiple and slice after.
        lane = 512
        pad = (-total) % lane
    padded_total = total + pad
    rows = padded_total // lane

    x_flat = x.reshape(-1)
    if pad:
        x_flat = jnp.pad(x_flat, (0, pad))
    x2d = x_flat.reshape(rows, lane)

    # ---- (3) VMEM-budget-driven row tile (multiple of the sublane packing) ----
    bytes_per_row = lane * itemsize
    rows_budget = max(sub, target_block_bytes // bytes_per_row)
    if rows <= rows_budget:
        tile_rows = rows  # whole array in one block (block == full dims is legal)
    else:
        tile_rows = max(sub, (rows_budget // sub) * sub)

    # ---- (4) v7x: guarantee >= 2 grid steps so both TensorCores stream --------
    if two_cores and rows >= 2 * sub:
        half = -(-rows // 2)                       # ceil(rows / 2)
        half = ((half + sub - 1) // sub) * sub     # round up to sublane multiple
        tile_rows = min(tile_rows, max(sub, half))

    grid = (pl.cdiv(rows, tile_rows),)

    out2d = pl.pallas_call(
        _identity_kernel,
        out_shape=jax.ShapeDtypeStruct((rows, lane), x.dtype),
        grid_spec=pltpu.PrefetchScalarGridSpec(
            num_scalar_prefetch=0,
            grid=grid,
            in_specs=[pl.BlockSpec((tile_rows, lane), lambda i: (i, 0))],
            out_specs=pl.BlockSpec((tile_rows, lane), lambda i: (i, 0)),
        ),
        compiler_params=pltpu.CompilerParams(
            dimension_semantics=("parallel",),
            vmem_limit_bytes=vmem_limit,
        ),
        # Identity => alias the input buffer to the output (needs caller donation
        # to be zero-copy; see docstring).  Each grid step touches a disjoint tile.
        input_output_aliases={0: 0},
        # Pure mem-bound copy: zero flops, 2x tensor bytes of HBM traffic.
        cost_estimate=pl.CostEstimate(
            flops=0,
            transcendentals=0,
            bytes_accessed=2 * padded_total * itemsize,
        ),
    )(x2d)

    out_flat = out2d.reshape(-1)
    if pad:
        out_flat = out_flat[:total]
    return out_flat.reshape(orig_shape)


if __name__ == "__main__":
    key = jax.random.PRNGKey(0)
    k1, k2, k3 = jax.random.split(key, 3)

    # (a) Spec-sized input (2,4,16,16): 8 KiB -> short-circuit identity path.
    x_small = jax.random.normal(k1, (2, 4, 16, 16), dtype=jnp.float32)
    y_small = base_model_forward(x_small)
    jax.block_until_ready(y_small)
    assert y_small.shape == x_small.shape
    assert jnp.allclose(y_small, x_small)

    # (b) Larger input (4 MiB) that exercises the tiled lane-dense Pallas copy.
    x_big = jax.random.normal(k2, (2, 4, 128, 1024), dtype=jnp.float32)
    y_big = base_model_forward(x_big)
    jax.block_until_ready(y_big)
    assert y_big.shape == x_big.shape
    assert jnp.allclose(y_big, x_big)

    # (c) Odd element count, forced through Pallas -> padded lane-dense path.
    x_odd = jax.random.normal(k3, (3, 5, 17, 11), dtype=jnp.float32)
    y_odd = base_model_forward(x_odd, min_pallas_bytes=0)
    jax.block_until_ready(y_odd)
    assert y_odd.shape == x_odd.shape
    assert jnp.allclose(y_odd, x_odd)

    # Mirror of BaseModel.summary(): trainable parameter count is 0.
    trainable_params = 0
    assert trainable_params == 0

    print("KERNEL_OK")
</pallas_src>

<mosaic_0001>
module attributes {stable_mosaic.version = 11 : i64} {
  func.func @_identity_kernel(%arg0: i32, %arg1: memref<8x65536xf32, #tpu.memory_space<vmem>>, %arg2: memref<8x65536xf32, #tpu.memory_space<vmem>>) attributes {dimension_semantics = [#tpu.dimension_semantics<parallel>], iteration_bounds = array<i64: 2>, scalar_prefetch = 0 : i64, scratch_operands = 0 : i64, tpu.core_type = #tpu.core_type<tc>, window_params = [{transform_indices = @transform_0, window_bounds = array<i64: 8, 65536>}, {transform_indices = @transform_1, window_bounds = array<i64: 8, 65536>}]} {
    %c0 = arith.constant 0 : index
    %c0_0 = arith.constant 0 : index
    %0 = vector.load %arg1[%c0, %c0_0] : memref<8x65536xf32, #tpu.memory_space<vmem>>, vector<8x65536xf32>
    %c0_1 = arith.constant 0 : index
    %c0_2 = arith.constant 0 : index
    %1 = vector.load %arg2[%c0_1, %c0_2] : memref<8x65536xf32, #tpu.memory_space<vmem>>, vector<8x65536xf32>
    tpu.vector_store %arg2[%c0_1, %c0_2], %0 {strides = array<i32>} : memref<8x65536xf32, #tpu.memory_space<vmem>>, vector<8x65536xf32>,
    return
  }
  func.func @transform_0(%arg0: i32) -> (i32, i32) {
    %c0_i32 = arith.constant 0 : i32
    %c0_i32_0 = arith.constant 0 : i32
    return %arg0, %c0_i32 : i32, i32
  }
  func.func @transform_1(%arg0: i32) -> (i32, i32) {
    %c0_i32 = arith.constant 0 : i32
    %c0_i32_0 = arith.constant 0 : i32
    return %arg0, %c0_i32 : i32, i32
  }
}

</mosaic_0001>

<bundles_post_ra>
// kernel: tpu_custom_call.1
= control target key start
LH: loop header
LB: loop body
LE: loop exit
PB: predicated region body
PF: predicated region fallthrough
CT: control target
= control target key end

     0   :  { %6 = vsyncpa [#allocation3], 0  ;;  %s2572_s0 = inlined_call_operand.hbm [shape: f32[16,65536], index: 0, kind: input, shape index: {}, may-alias: {0,1}]   ;;  %s2573_s1 = inlined_call_operand.hbm [shape: f32[16,65536], index: 1, kind: output, shape index: {}, may-alias: {0,1}]  }
   0x1   :  { %8 = vsyncpa [#allocation3 + $0x1], 0 }
   0x2   :  { %9 = vsyncpa [#allocation4], 0 }
   0x3   :  { %11 = vsyncpa [#allocation4 + $0x1], 0  ;;  %s1416_s6 = smov 0   ;;  %s1418_s7 = smov 0  }
   0x4   :  { %s1420_s8 = smov 0   ;;  %s1422_s9 = smov 0  }
   0x5 LB: > { %s1437_s10 = sadd.s32 4294967295, %s1404_s9   ;;  %s1246_s11 = sadd.s32 4294967294, %s1404_s9   ;;  %s1404_s9 = sphi %s1422_s9, %s2583_s9   ;;  %s1400_s8 = sphi %s1420_s8, %s2582_s8   ;;  %s1396_s7 = sphi %s1418_s7, %s2581_s7   ;;  %s1392_s6 = sphi %s1416_s6, %s2580_s6  }
   0x6   : > { %s1441_s12 = sadd.s32 1, %s1404_s9   ;;  %s24_s13 = sadd.s32 1, %s1400_s8 }
   0x7   : > { %s21_s14 = ssub.s32 %s1404_s9, %s1441_s12  ;;  %p31_p0 = scmp.ne.s32.totalorder %s1400_s8, %s1396_s7 }
   0x8   : > { %p22_p1 = scmp.eq.s32.totalorder %s21_s14, 0  ;;  %p32_p2 = scmp.eq.s32.totalorder %s1404_s9, 0 }
   0x9   : > { %p37_p3 = scmp.ne.s32.totalorder %s1396_s7, %s1392_s6  ;;  %p38_p4 = scmp.eq.s32.totalorder %s1437_s10, 0 }
   0xa   : > { %s1453_s15 = scalar_select %p22_p1, %s1400_s8, %s24_s13  }
   0xb   : > { %p1455_p5 = por %p32_p2, %p31_p0  ;;  %p1459_p6 = por %p38_p4, %p37_p3 }
   0xc   : > { %p61_p7 = scmp.eq.s32.totalorder %s1437_s10, 1  ;;  %p67_p8 = scmp.eq.s32.totalorder %s1246_s11, 1 }
   0xd   : > { %p1274_p10 = scmp.lt.s32.totalorder %s1404_s9, 2  ;;  %s87_s20 = sand.u32 1, %s1400_s8  }
   0xe   : > { %p1466_p11 = por %p61_p7, %p31_p0  ;;  %p1470_p12 = por %p67_p8, %p37_p3 }
   0xf   : > { %s1260_s21 = sshll.u32 %s1404_s9, 12  ;;  %s1249_s22 = sshll.u32 %s87_s20, 12 }
  0x10   : > { %s96_s25 = scalar_lea.hbm %s2572_s0, %s1260_s21  ;;  %s91_s27 = scalar_lea.vmem [#allocation2], %s1249_s22 }
  0x11   : > { %s98_s26 = sshll.u32 %s96_s25, 4  ;;  %s100_s28 = sshll.u32 %s91_s27, 4  ;;  %s99_s26 = int_to_ptr.hbm [resolvable:$true] %s98_s26  ;;  %s101_s28 = int_to_ptr.vmem [resolvable:$true] %s100_s28 }
  0x12   : > { %p1481_p13 = pnand %p1274_p10, %p1455_p5  ;;  %p1252_p0 = scmp.ge.s32.totalorder %s1404_s9, 1 }
  0x13   : > { %p105_p1 = scmp.lt.s32.totalorder %s1404_s9, 3  ;;  %s88_s30 = scalar_lea.sflag [#allocation3], %s87_s20 }
  0x14   : > { %s1308_s2 = sshra.s32 %s99_s26, 4  ;;  %p1312_p3 = pneg %p1481_p13  ;;  %s1309_s2 = int_to_ptr.hbm [resolvable:$true] %s1308_s2 }
  0x15   : > { %s1310_s3 = scalar_lea.hbm %s1309_s2, 4096  ;;  %s1315_s11 = scalar_lea.hbm %s2572_s0, 8192 }
  0x16   : > { %p1311_p2 = scmp.ne.s32.totalorder %s1309_s2, %s1310_s3  ;;  %p1316_p5 = scmp.lt.s32.totalorder %s1309_s2, %s2572_s0 }
  0x17   : > { %p1317_p8 = scmp.lt.s32.totalorder %s1315_s11, %s1310_s3 }
  0x18   : > { %p1313_p4 = pnand %p1312_p3, %p1311_p2 }
  0x19   : > { %p1318_p10 = por %p1317_p8, %p1316_p5 }
  0x1a   : > { %p1314_p7 = pneg %p1313_p4 }
  0x1c   : > { %p1319_p9 = pnand %p1318_p10, %p1314_p7 }
  0x1e   : > { %1322 = shalt.err (!%p1319_p9)
}
  0x1f   : > { %1269 = dma.hbm_to_vmem [thread:$0]  (!%p1481_p13), %s99_s26, 65536, %s101_s28, %s88_s30  }
  0x20   : > { %p106_p2 = pnand %p1252_p0, %p105_p1 }
  0x21   : > { %s1502_s16 = sand.u32 (!%p106_p2), 1, %s1396_s7  }
  0x22   : > { %109 = sbr.rel (%p106_p2) target bundleno = 555 (0x22b), region = 24  ;;  %s1253_s20 = sshll.u32 (!%p106_p2), %s1502_s16, 12 }
  0x23   : > { %s112_s21 = scalar_lea.sflag (!%p106_p2), [#allocation3], %s1502_s16  ;;  %s1506_s22 = scalar_lea.vmem (!%p106_p2), [#allocation2], %s1253_s20 }
  0x27   : > { %1383 = dma.done.wait (%p1459_p6), %s112_s21, 65536  }
  0x28   : > { %1385 = vsyncadd (%p1459_p6), %s112_s21, 4294901760  ;;  %v135_v0 = vld [vmem:[%s1506_s22] sm:$0xff]  ;;  %v136_v1 = vld [vmem:[%s1506_s22 + $0x8] sm:$0xff]  ;;  %s1515_s23 = scalar_lea.vmem [#allocation5], %s1253_s20  ;;  %s1261_s17 = sshll.u32 %s1437_s10, 12 }
  0x29   : > { %v137_v2 = vld [vmem:[%s1506_s22 + $0x10] sm:$0xff]  ;;  %647 = vst [vmem:[%s1515_s23] sm:$0xff] %v135_v0  ;;  %v138_v3 = vld [vmem:[%s1506_s22 + $0x18] sm:$0xff]  ;;  %v139_v4 = vld [vmem:[%s1506_s22 + $0x20] sm:$0xff]  ;;  %s1171_s26 = scalar_lea.hbm %s2573_s1, %s1261_s17  ;;  %s1173_s10 = sshll.u32 %s1515_s23, 4  ;;  %s1174_s10 = int_to_ptr.vmem [resolvable:$true] %s1173_s10 }
  0x2a   : > { %648 = vst [vmem:[%s1515_s23 + $0x8] sm:$0xff] %v136_v1  ;;  %v140_v5 = vld [vmem:[%s1506_s22 + $0x28] sm:$0xff]  ;;  %v141_v6 = vld [vmem:[%s1506_s22 + $0x30] sm:$0xff]  ;;  %v142_v7 = vld [vmem:[%s1506_s22 + $0x38] sm:$0xff]  ;;  %s1175_s27 = sshll.u32 %s1171_s26, 4  ;;  %s1160_s28 = scalar_lea.sflag [#allocation4], %s1502_s16  ;;  %s1176_s27 = int_to_ptr.hbm [resolvable:$true] %s1175_s27 }
  0x2b   : > { %649 = vst [vmem:[%s1515_s23 + $0x10] sm:$0xff] %v137_v2  ;;  %v143_v8 = vld [vmem:[%s1506_s22 + $0x40] sm:$0xff]  ;;  %v144_v9 = vld [vmem:[%s1506_s22 + $0x48] sm:$0xff]  ;;  %v145_v10 = vld [vmem:[%s1506_s22 + $0x50] sm:$0xff]  ;;  %s1352_s29 = sshra.s32 %s1176_s27, 4  ;;  %s1358_s4 = scalar_lea.hbm %s2573_s1, 8192  ;;  %s1353_s29 = int_to_ptr.hbm [resolvable:$true] %s1352_s29 }
  0x2c   : > { %650 = vst [vmem:[%s1515_s23 + $0x18] sm:$0xff] %v138_v3  ;;  %v146_v11 = vld [vmem:[%s1506_s22 + $0x58] sm:$0xff]  ;;  %v147_v12 = vld [vmem:[%s1506_s22 + $0x60] sm:$0xff]  ;;  %v148_v13 = vld [vmem:[%s1506_s22 + $0x68] sm:$0xff]  ;;  %s1354_s30 = scalar_lea.hbm %s1353_s29, 4096  ;;  %p1359_p0 = scmp.lt.s32.totalorder %s1353_s29, %s2573_s1 }
  0x2d   : > { %651 = vst [vmem:[%s1515_s23 + $0x20] sm:$0xff] %v139_v4  ;;  %v149_v14 = vld [vmem:[%s1506_s22 + $0x70] sm:$0xff]  ;;  %v150_v15 = vld [vmem:[%s1506_s22 + $0x78] sm:$0xff]  ;;  %v151_v16 = vld [vmem:[%s1506_s22 + $0x80] sm:$0xff]  ;;  %p1355_p6 = scmp.ne.s32.totalorder %s1353_s29, %s1354_s30  ;;  %p1360_p1 = scmp.lt.s32.totalorder %s1358_s4, %s1354_s30 }
  0x2e   : > { %652 = vst [vmem:[%s1515_s23 + $0x28] sm:$0xff] %v140_v5  ;;  %v152_v17 = vld [vmem:[%s1506_s22 + $0x88] sm:$0xff]  ;;  %v153_v18 = vld [vmem:[%s1506_s22 + $0x90] sm:$0xff]  ;;  %v154_v19 = vld [vmem:[%s1506_s22 + $0x98] sm:$0xff] }
  0x2f   : > { %653 = vst [vmem:[%s1515_s23 + $0x30] sm:$0xff] %v141_v6  ;;  %v155_v20 = vld [vmem:[%s1506_s22 + $0xa0] sm:$0xff]  ;;  %v156_v21 = vld [vmem:[%s1506_s22 + $0xa8] sm:$0xff]  ;;  %v157_v22 = vld [vmem:[%s1506_s22 + $0xb0] sm:$0xff]  ;;  %p1356_p9 = pnand %p1355_p6, %p1466_p11  ;;  %p1361_p3 = por %p1360_p1, %p1359_p0 }
  0x30   : > { %654 = vst [vmem:[%s1515_s23 + $0x38] sm:$0xff] %v142_v7  ;;  %v158_v23 = vld [vmem:[%s1506_s22 + $0xb8] sm:$0xff]  ;;  %v159_v24 = vld [vmem:[%s1506_s22 + $0xc0] sm:$0xff]  ;;  %v160_v25 = vld [vmem:[%s1506_s22 + $0xc8] sm:$0xff] }
  0x31   : > { %655 = vst [vmem:[%s1515_s23 + $0x40] sm:$0xff] %v143_v8  ;;  %v161_v26 = vld [vmem:[%s1506_s22 + $0xd0] sm:$0xff]  ;;  %v162_v27 = vld [vmem:[%s1506_s22 + $0xd8] sm:$0xff]  ;;  %v163_v28 = vld [vmem:[%s1506_s22 + $0xe0] sm:$0xff]  ;;  %p1357_p13 = pneg %p1356_p9 }
  0x32   : > { %656 = vst [vmem:[%s1515_s23 + $0x48] sm:$0xff] %v144_v9  ;;  %v164_v29 = vld [vmem:[%s1506_s22 + $0xe8] sm:$0xff]  ;;  %v165_v30 = vld [vmem:[%s1506_s22 + $0xf0] sm:$0xff]  ;;  %v166_v31 = vld [vmem:[%s1506_s22 + $0xf8] sm:$0xff] }
  0x33   : > { %657 = vst [vmem:[%s1515_s23 + $0x50] sm:$0xff] %v145_v10  ;;  %v167_v32 = vld [vmem:[%s1506_s22 + $0x100] sm:$0xff]  ;;  %v168_v33 = vld [vmem:[%s1506_s22 + $0x108] sm:$0xff]  ;;  %v169_v34 = vld [vmem:[%s1506_s22 + $0x110] sm:$0xff]  ;;  %p1362_p4 = pnand %p1361_p3, %p1357_p13 }
  0x34   : > { %658 = vst [vmem:[%s1515_s23 + $0x58] sm:$0xff] %v146_v11  ;;  %v170_v35 = vld [vmem:[%s1506_s22 + $0x118] sm:$0xff]  ;;  %v171_v36 = vld [vmem:[%s1506_s22 + $0x120] sm:$0xff]  ;;  %v172_v37 = vld [vmem:[%s1506_s22 + $0x128] sm:$0xff] }
  0x35   : > { %659 = vst [vmem:[%s1515_s23 + $0x60] sm:$0xff] %v147_v12  ;;  %v173_v38 = vld [vmem:[%s1506_s22 + $0x130] sm:$0xff]  ;;  %v174_v39 = vld [vmem:[%s1506_s22 + $0x138] sm:$0xff]  ;;  %v175_v40 = vld [vmem:[%s1506_s22 + $0x140] sm:$0xff] }
  0x36   : > { %660 = vst [vmem:[%s1515_s23 + $0x68] sm:$0xff] %v148_v13  ;;  %v176_v41 = vld [vmem:[%s1506_s22 + $0x148] sm:$0xff]  ;;  %v177_v42 = vld [vmem:[%s1506_s22 + $0x150] sm:$0xff]  ;;  %v178_v43 = vld [vmem:[%s1506_s22 + $0x158] sm:$0xff] }
  0x37   : > { %661 = vst [vmem:[%s1515_s23 + $0x70] sm:$0xff] %v149_v14  ;;  %v179_v44 = vld [vmem:[%s1506_s22 + $0x160] sm:$0xff]  ;;  %v180_v45 = vld [vmem:[%s1506_s22 + $0x168] sm:$0xff]  ;;  %v181_v46 = vld [vmem:[%s1506_s22 + $0x170] sm:$0xff] }
  0x38   : > { %662 = vst [vmem:[%s1515_s23 + $0x78] sm:$0xff] %v150_v15  ;;  %v182_v47 = vld [vmem:[%s1506_s22 + $0x178] sm:$0xff]  ;;  %v183_v48 = vld [vmem:[%s1506_s22 + $0x180] sm:$0xff]  ;;  %v184_v49 = vld [vmem:[%s1506_s22 + $0x188] sm:$0xff] }
  0x39   : > { %663 = vst [vmem:[%s1515_s23 + $0x80] sm:$0xff] %v151_v16  ;;  %v185_v50 = vld [vmem:[%s1506_s22 + $0x190] sm:$0xff]  ;;  %v186_v51 = vld [vmem:[%s1506_s22 + $0x198] sm:$0xff]  ;;  %v187_v52 = vld [vmem:[%s1506_s22 + $0x1a0] sm:$0xff] }
  0x3a   : > { %664 = vst [vmem:[%s1515_s23 + $0x88] sm:$0xff] %v152_v17  ;;  %v188_v53 = vld [vmem:[%s1506_s22 + $0x1a8] sm:$0xff]  ;;  %v189_v54 = vld [vmem:[%s1506_s22 + $0x1b0] sm:$0xff]  ;;  %v190_v55 = vld [vmem:[%s1506_s22 + $0x1b8] sm:$0xff] }
  0x3b   : > { %665 = vst [vmem:[%s1515_s23 + $0x90] sm:$0xff] %v153_v18  ;;  %v191_v56 = vld [vmem:[%s1506_s22 + $0x1c0] sm:$0xff]  ;;  %v192_v57 = vld [vmem:[%s1506_s22 + $0x1c8] sm:$0xff]  ;;  %v193_v58 = vld [vmem:[%s1506_s22 + $0x1d0] sm:$0xff] }
  0x3c   : > { %666 = vst [vmem:[%s1515_s23 + $0x98] sm:$0xff] %v154_v19  ;;  %v194_v59 = vld [vmem:[%s1506_s22 + $0x1d8] sm:$0xff]  ;;  %v195_v60 = vld [vmem:[%s1506_s22 + $0x1e0] sm:$0xff]  ;;  %v196_v61 = vld [vmem:[%s1506_s22 + $0x1e8] sm:$0xff] }
  0x3d   : > { %667 = vst [vmem:[%s1515_s23 + $0xa0] sm:$0xff] %v155_v20  ;;  %v197_v62 = vld [vmem:[%s1506_s22 + $0x1f0] sm:$0xff]  ;;  %v198_v63 = vld [vmem:[%s1506_s22 + $0x1f8] sm:$0xff]  ;;  %v199_v0 = vld [vmem:[%s1506_s22 + $0x200] sm:$0xff] }
  0x3e   : > { %668 = vst [vmem:[%s1515_s23 + $0xa8] sm:$0xff] %v156_v21  ;;  %v200_v1 = vld [vmem:[%s1506_s22 + $0x208] sm:$0xff]  ;;  %v201_v2 = vld [vmem:[%s1506_s22 + $0x210] sm:$0xff]  ;;  %v202_v3 = vld [vmem:[%s1506_s22 + $0x218] sm:$0xff] }
  0x3f   : > { %669 = vst [vmem:[%s1515_s23 + $0xb0] sm:$0xff] %v157_v22  ;;  %v203_v4 = vld [vmem:[%s1506_s22 + $0x220] sm:$0xff]  ;;  %v204_v5 = vld [vmem:[%s1506_s22 + $0x228] sm:$0xff]  ;;  %v205_v6 = vld [vmem:[%s1506_s22 + $0x230] sm:$0xff] }
  0x40   : > { %670 = vst [vmem:[%s1515_s23 + $0xb8] sm:$0xff] %v158_v23  ;;  %v206_v7 = vld [vmem:[%s1506_s22 + $0x238] sm:$0xff]  ;;  %v207_v8 = vld [vmem:[%s1506_s22 + $0x240] sm:$0xff]  ;;  %v208_v9 = vld [vmem:[%s1506_s22 + $0x248] sm:$0xff] }
  0x41   : > { %671 = vst [vmem:[%s1515_s23 + $0xc0] sm:$0xff] %v159_v24  ;;  %v209_v10 = vld [vmem:[%s1506_s22 + $0x250] sm:$0xff]  ;;  %v210_v11 = vld [vmem:[%s1506_s22 + $0x258] sm:$0xff]  ;;  %v211_v12 = vld [vmem:[%s1506_s22 + $0x260] sm:$0xff] }
  0x42   : > { %672 = vst [vmem:[%s1515_s23 + $0xc8] sm:$0xff] %v160_v25  ;;  %v212_v13 = vld [vmem:[%s1506_s22 + $0x268] sm:$0xff]  ;;  %v213_v14 = vld [vmem:[%s1506_s22 + $0x270] sm:$0xff]  ;;  %v214_v15 = vld [vmem:[%s1506_s22 + $0x278] sm:$0xff] }
  0x43   : > { %673 = vst [vmem:[%s1515_s23 + $0xd0] sm:$0xff] %v161_v26  ;;  %v215_v16 = vld [vmem:[%s1506_s22 + $0x280] sm:$0xff]  ;;  %v216_v17 = vld [vmem:[%s1506_s22 + $0x288] sm:$0xff]  ;;  %v217_v18 = vld [vmem:[%s1506_s22 + $0x290] sm:$0xff] }
  0x44   : > { %674 = vst [vmem:[%s1515_s23 + $0xd8] sm:$0xff] %v162_v27  ;;  %v218_v19 = vld [vmem:[%s1506_s22 + $0x298] sm:$0xff]  ;;  %v219_v20 = vld [vmem:[%s1506_s22 + $0x2a0] sm:$0xff]  ;;  %v220_v21 = vld [vmem:[%s1506_s22 + $0x2a8] sm:$0xff] }
  0x45   : > { %675 = vst [vmem:[%s1515_s23 + $0xe0] sm:$0xff] %v163_v28  ;;  %v221_v22 = vld [vmem:[%s1506_s22 + $0x2b0] sm:$0xff]  ;;  %v222_v23 = vld [vmem:[%s1506_s22 + $0x2b8] sm:$0xff]  ;;  %v223_v24 = vld [vmem:[%s1506_s22 + $0x2c0] sm:$0xff] }
  0x46   : > { %676 = vst [vmem:[%s1515_s23 + $0xe8] sm:$0xff] %v164_v29  ;;  %v224_v25 = vld [vmem:[%s1506_s22 + $0x2c8] sm:$0xff]  ;;  %v225_v26 = vld [vmem:[%s1506_s22 + $0x2d0] sm:$0xff]  ;;  %v226_v27 = vld [vmem:[%s1506_s22 + $0x2d8] sm:$0xff] }
  0x47   : > { %677 = vst [vmem:[%s1515_s23 + $0xf0] sm:$0xff] %v165_v30  ;;  %v227_v28 = vld [vmem:[%s1506_s22 + $0x2e0] sm:$0xff]  ;;  %v228_v29 = vld [vmem:[%s1506_s22 + $0x2e8] sm:$0xff]  ;;  %v229_v30 = vld [vmem:[%s1506_s22 + $0x2f0] sm:$0xff] }
  0x48   : > { %678 = vst [vmem:[%s1515_s23 + $0xf8] sm:$0xff] %v166_v31  ;;  %v230_v31 = vld [vmem:[%s1506_s22 + $0x2f8] sm:$0xff] }
  0x49   : > { %679 = vst [vmem:[%s1515_s23 + $0x100] sm:$0xff] %v167_v32  ;;  %v231_v32 = vld [vmem:[%s1506_s22 + $0x300] sm:$0xff] }
  0x4a   : > { %680 = vst [vmem:[%s1515_s23 + $0x108] sm:$0xff] %v168_v33  ;;  %v232_v33 = vld [vmem:[%s1506_s22 + $0x308] sm:$0xff] }
  0x4b   : > { %681 = vst [vmem:[%s1515_s23 + $0x110] sm:$0xff] %v169_v34  ;;  %v233_v34 = vld [vmem:[%s1506_s22 + $0x310] sm:$0xff] }
  0x4c   : > { %682 = vst [vmem:[%s1515_s23 + $0x118] sm:$0xff] %v170_v35  ;;  %v234_v35 = vld [vmem:[%s1506_s22 + $0x318] sm:$0xff] }
  0x4d   : > { %683 = vst [vmem:[%s1515_s23 + $0x120] sm:$0xff] %v171_v36  ;;  %v235_v36 = vld [vmem:[%s1506_s22 + $0x320] sm:$0xff] }
  0x4e   : > { %684 = vst [vmem:[%s1515_s23 + $0x128] sm:$0xff] %v172_v37  ;;  %v236_v37 = vld [vmem:[%s1506_s22 + $0x328] sm:$0xff] }
  0x4f   : > { %685 = vst [vmem:[%s1515_s23 + $0x130] sm:$0xff] %v173_v38  ;;  %v237_v38 = vld [vmem:[%s1506_s22 + $0x330] sm:$0xff] }
  0x50   : > { %686 = vst [vmem:[%s1515_s23 + $0x138] sm:$0xff] %v174_v39  ;;  %v238_v39 = vld [vmem:[%s1506_s22 + $0x338] sm:$0xff] }
  0x51   : > { %687 = vst [vmem:[%s1515_s23 + $0x140] sm:$0xff] %v175_v40  ;;  %v239_v40 = vld [vmem:[%s1506_s22 + $0x340] sm:$0xff] }
  0x52   : > { %688 = vst [vmem:[%s1515_s23 + $0x148] sm:$0xff] %v176_v41  ;;  %v240_v41 = vld [vmem:[%s1506_s22 + $0x348] sm:$0xff] }
  0x53   : > { %689 = vst [vmem:[%s1515_s23 + $0x150] sm:$0xff] %v177_v42  ;;  %v241_v42 = vld [vmem:[%s1506_s22 + $0x350] sm:$0xff] }
  0x54   : > { %690 = vst [vmem:[%s1515_s23 + $0x158] sm:$0xff] %v178_v43  ;;  %v242_v43 = vld [vmem:[%s1506_s22 + $0x358] sm:$0xff] }
  0x55   : > { %691 = vst [vmem:[%s1515_s23 + $0x160] sm:$0xff] %v179_v44  ;;  %v243_v44 = vld [vmem:[%s1506_s22 + $0x360] sm:$0xff] }
  0x56   : > { %692 = vst [vmem:[%s1515_s23 + $0x168] sm:$0xff] %v180_v45  ;;  %v244_v45 = vld [vmem:[%s1506_s22 + $0x368] sm:$0xff] }
  0x57   : > { %693 = vst [vmem:[%s1515_s23 + $0x170] sm:$0xff] %v181_v46  ;;  %v245_v46 = vld [vmem:[%s1506_s22 + $0x370] sm:$0xff] }
  0x58   : > { %694 = vst [vmem:[%s1515_s23 + $0x178] sm:$0xff] %v182_v47  ;;  %v246_v47 = vld [vmem:[%s1506_s22 + $0x378] sm:$0xff] }
  0x59   : > { %695 = vst [vmem:[%s1515_s23 + $0x180] sm:$0xff] %v183_v48  ;;  %v247_v48 = vld [vmem:[%s1506_s22 + $0x380] sm:$0xff] }
  0x5a   : > { %696 = vst [vmem:[%s1515_s23 + $0x188] sm:$0xff] %v184_v49  ;;  %v248_v49 = vld [vmem:[%s1506_s22 + $0x388] sm:$0xff] }
  0x5b   : > { %697 = vst [vmem:[%s1515_s23 + $0x190] sm:$0xff] %v185_v50  ;;  %v249_v50 = vld [vmem:[%s1506_s22 + $0x390] sm:$0xff] }
  0x5c   : > { %698 = vst [vmem:[%s1515_s23 + $0x198] sm:$0xff] %v186_v51  ;;  %v250_v51 = vld [vmem:[%s1506_s22 + $0x398] sm:$0xff] }
  0x5d   : > { %699 = vst [vmem:[%s1515_s23 + $0x1a0] sm:$0xff] %v187_v52  ;;  %v251_v52 = vld [vmem:[%s1506_s22 + $0x3a0] sm:$0xff] }
  0x5e   : > { %700 = vst [vmem:[%s1515_s23 + $0x1a8] sm:$0xff] %v188_v53  ;;  %v252_v53 = vld [vmem:[%s1506_s22 + $0x3a8] sm:$0xff] }
  0x5f   : > { %701 = vst [vmem:[%s1515_s23 + $0x1b0] sm:$0xff] %v189_v54  ;;  %v253_v54 = vld [vmem:[%s1506_s22 + $0x3b0] sm:$0xff] }
  0x60   : > { %702 = vst [vmem:[%s1515_s23 + $0x1b8] sm:$0xff] %v190_v55  ;;  %v254_v55 = vld [vmem:[%s1506_s22 + $0x3b8] sm:$0xff] }
  0x61   : > { %703 = vst [vmem:[%s1515_s23 + $0x1c0] sm:$0xff] %v191_v56  ;;  %v255_v56 = vld [vmem:[%s1506_s22 + $0x3c0] sm:$0xff] }
  0x62   : > { %704 = vst [vmem:[%s1515_s23 + $0x1c8] sm:$0xff] %v192_v57  ;;  %v256_v57 = vld [vmem:[%s1506_s22 + $0x3c8] sm:$0xff] }
  0x63   : > { %705 = vst [vmem:[%s1515_s23 + $0x1d0] sm:$0xff] %v193_v58  ;;  %v257_v58 = vld [vmem:[%s1506_s22 + $0x3d0] sm:$0xff] }
  0x64   : > { %706 = vst [vmem:[%s1515_s23 + $0x1d8] sm:$0xff] %v194_v59  ;;  %v258_v59 = vld [vmem:[%s1506_s22 + $0x3d8] sm:$0xff] }
  0x65   : > { %707 = vst [vmem:[%s1515_s23 + $0x1e0] sm:$0xff] %v195_v60  ;;  %v259_v60 = vld [vmem:[%s1506_s22 + $0x3e0] sm:$0xff] }
  0x66   : > { %708 = vst [vmem:[%s1515_s23 + $0x1e8] sm:$0xff] %v196_v61  ;;  %v260_v61 = vld [vmem:[%s1506_s22 + $0x3e8] sm:$0xff] }
  0x67   : > { %709 = vst [vmem:[%s1515_s23 + $0x1f0] sm:$0xff] %v197_v62  ;;  %v261_v62 = vld [vmem:[%s1506_s22 + $0x3f0] sm:$0xff] }
  0x68   : > { %710 = vst [vmem:[%s1515_s23 + $0x1f8] sm:$0xff] %v198_v63  ;;  %v262_v63 = vld [vmem:[%s1506_s22 + $0x3f8] sm:$0xff] }
  0x69   : > { %711 = vst [vmem:[%s1515_s23 + $0x200] sm:$0xff] %v199_v0  ;;  %v263_v0 = vld [vmem:[%s1506_s22 + $0x400] sm:$0xff] }
  0x6a   : > { %712 = vst [vmem:[%s1515_s23 + $0x208] sm:$0xff] %v200_v1  ;;  %v264_v1 = vld [vmem:[%s1506_s22 + $0x408] sm:$0xff] }
  0x6b   : > { %713 = vst [vmem:[%s1515_s23 + $0x210] sm:$0xff] %v201_v2  ;;  %v265_v2 = vld [vmem:[%s1506_s22 + $0x410] sm:$0xff] }
  0x6c   : > { %714 = vst [vmem:[%s1515_s23 + $0x218] sm:$0xff] %v202_v3  ;;  %v266_v3 = vld [vmem:[%s1506_s22 + $0x418] sm:$0xff] }
  0x6d   : > { %715 = vst [vmem:[%s1515_s23 + $0x220] sm:$0xff] %v203_v4  ;;  %v267_v4 = vld [vmem:[%s1506_s22 + $0x420] sm:$0xff] }
  0x6e   : > { %716 = vst [vmem:[%s1515_s23 + $0x228] sm:$0xff] %v204_v5  ;;  %v268_v5 = vld [vmem:[%s1506_s22 + $0x428] sm:$0xff] }
  0x6f   : > { %717 = vst [vmem:[%s1515_s23 + $0x230] sm:$0xff] %v205_v6  ;;  %v269_v6 = vld [vmem:[%s1506_s22 + $0x430] sm:$0xff] }
  0x70   : > { %718 = vst [vmem:[%s1515_s23 + $0x238] sm:$0xff] %v206_v7  ;;  %v270_v7 = vld [vmem:[%s1506_s22 + $0x438] sm:$0xff] }
  0x71   : > { %719 = vst [vmem:[%s1515_s23 + $0x240] sm:$0xff] %v207_v8  ;;  %v271_v8 = vld [vmem:[%s1506_s22 + $0x440] sm:$0xff] }
  0x72   : > { %720 = vst [vmem:[%s1515_s23 + $0x248] sm:$0xff] %v208_v9  ;;  %v272_v9 = vld [vmem:[%s1506_s22 + $0x448] sm:$0xff] }
  0x73   : > { %721 = vst [vmem:[%s1515_s23 + $0x250] sm:$0xff] %v209_v10  ;;  %v273_v10 = vld [vmem:[%s1506_s22 + $0x450] sm:$0xff] }
  0x74   : > { %722 = vst [vmem:[%s1515_s23 + $0x258] sm:$0xff] %v210_v11  ;;  %v274_v11 = vld [vmem:[%s1506_s22 + $0x458] sm:$0xff] }
  0x75   : > { %723 = vst [vmem:[%s1515_s23 + $0x260] sm:$0xff] %v211_v12  ;;  %v275_v12 = vld [vmem:[%s1506_s22 + $0x460] sm:$0xff] }
  0x76   : > { %724 = vst [vmem:[%s1515_s23 + $0x268] sm:$0xff] %v212_v13  ;;  %v276_v13 = vld [vmem:[%s1506_s22 + $0x468] sm:$0xff] }
  0x77   : > { %725 = vst [vmem:[%s1515_s23 + $0x270] sm:$0xff] %v213_v14  ;;  %v277_v14 = vld [vmem:[%s1506_s22 + $0x470] sm:$0xff] }
  0x78   : > { %726 = vst [vmem:[%s1515_s23 + $0x278] sm:$0xff] %v214_v15  ;;  %v278_v15 = vld [vmem:[%s1506_s22 + $0x478] sm:$0xff] }
  0x79   : > { %727 = vst [vmem:[%s1515_s23 + $0x280] sm:$0xff] %v215_v16  ;;  %v279_v16 = vld [vmem:[%s1506_s22 + $0x480] sm:$0xff] }
  0x7a   : > { %728 = vst [vmem:[%s1515_s23 + $0x288] sm:$0xff] %v216_v17  ;;  %v280_v17 = vld [vmem:[%s1506_s22 + $0x488] sm:$0xff] }
  0x7b   : > { %729 = vst [vmem:[%s1515_s23 + $0x290] sm:$0xff] %v217_v18  ;;  %v281_v18 = vld [vmem:[%s1506_s22 + $0x490] sm:$0xff] }
  0x7c   : > { %730 = vst [vmem:[%s1515_s23 + $0x298] sm:$0xff] %v218_v19  ;;  %v282_v19 = vld [vmem:[%s1506_s22 + $0x498] sm:$0xff] }
  0x7d   : > { %731 = vst [vmem:[%s1515_s23 + $0x2a0] sm:$0xff] %v219_v20  ;;  %v283_v20 = vld [vmem:[%s1506_s22 + $0x4a0] sm:$0xff] }
  0x7e   : > { %732 = vst [vmem:[%s1515_s23 + $0x2a8] sm:$0xff] %v220_v21  ;;  %v284_v21 = vld [vmem:[%s1506_s22 + $0x4a8] sm:$0xff] }
  0x7f   : > { %733 = vst [vmem:[%s1515_s23 + $0x2b0] sm:$0xff] %v221_v22  ;;  %v285_v22 = vld [vmem:[%s1506_s22 + $0x4b0] sm:$0xff] }
  0x80   : > { %734 = vst [vmem:[%s1515_s23 + $0x2b8] sm:$0xff] %v222_v23  ;;  %v286_v23 = vld [vmem:[%s1506_s22 + $0x4b8] sm:$0xff] }
  0x81   : > { %735 = vst [vmem:[%s1515_s23 + $0x2c0] sm:$0xff] %v223_v24  ;;  %v287_v24 = vld [vmem:[%s1506_s22 + $0x4c0] sm:$0xff] }
  0x82   : > { %736 = vst [vmem:[%s1515_s23 + $0x2c8] sm:$0xff] %v224_v25  ;;  %v288_v25 = vld [vmem:[%s1506_s22 + $0x4c8] sm:$0xff] }
  0x83   : > { %737 = vst [vmem:[%s1515_s23 + $0x2d0] sm:$0xff] %v225_v26  ;;  %v289_v26 = vld [vmem:[%s1506_s22 + $0x4d0] sm:$0xff] }
  0x84   : > { %738 = vst [vmem:[%s1515_s23 + $0x2d8] sm:$0xff] %v226_v27  ;;  %v290_v27 = vld [vmem:[%s1506_s22 + $0x4d8] sm:$0xff] }
  0x85   : > { %739 = vst [vmem:[%s1515_s23 + $0x2e0] sm:$0xff] %v227_v28  ;;  %v291_v28 = vld [vmem:[%s1506_s22 + $0x4e0] sm:$0xff] }
  0x86   : > { %740 = vst [vmem:[%s1515_s23 + $0x2e8] sm:$0xff] %v228_v29  ;;  %v292_v29 = vld [vmem:[%s1506_s22 + $0x4e8] sm:$0xff] }
  0x87   : > { %741 = vst [vmem:[%s1515_s23 + $0x2f0] sm:$0xff] %v229_v30  ;;  %v293_v30 = vld [vmem:[%s1506_s22 + $0x4f0] sm:$0xff] }
  0x88   : > { %742 = vst [vmem:[%s1515_s23 + $0x2f8] sm:$0xff] %v230_v31  ;;  %v294_v31 = vld [vmem:[%s1506_s22 + $0x4f8] sm:$0xff] }
  0x89   : > { %743 = vst [vmem:[%s1515_s23 + $0x300] sm:$0xff] %v231_v32  ;;  %v295_v32 = vld [vmem:[%s1506_s22 + $0x500] sm:$0xff] }
  0x8a   : > { %744 = vst [vmem:[%s1515_s23 + $0x308] sm:$0xff] %v232_v33  ;;  %v296_v33 = vld [vmem:[%s1506_s22 + $0x508] sm:$0xff] }
  0x8b   : > { %745 = vst [vmem:[%s1515_s23 + $0x310] sm:$0xff] %v233_v34  ;;  %v297_v34 = vld [vmem:[%s1506_s22 + $0x510] sm:$0xff] }
  0x8c   : > { %746 = vst [vmem:[%s1515_s23 + $0x318] sm:$0xff] %v234_v35  ;;  %v298_v35 = vld [vmem:[%s1506_s22 + $0x518] sm:$0xff] }
  0x8d   : > { %747 = vst [vmem:[%s1515_s23 + $0x320] sm:$0xff] %v235_v36  ;;  %v299_v36 = vld [vmem:[%s1506_s22 + $0x520] sm:$0xff] }
  0x8e   : > { %748 = vst [vmem:[%s1515_s23 + $0x328] sm:$0xff] %v236_v37  ;;  %v300_v37 = vld [vmem:[%s1506_s22 + $0x528] sm:$0xff] }
  0x8f   : > { %749 = vst [vmem:[%s1515_s23 + $0x330] sm:$0xff] %v237_v38  ;;  %v301_v38 = vld [vmem:[%s1506_s22 + $0x530] sm:$0xff] }
  0x90   : > { %750 = vst [vmem:[%s1515_s23 + $0x338] sm:$0xff] %v238_v39  ;;  %v302_v39 = vld [vmem:[%s1506_s22 + $0x538] sm:$0xff] }
  0x91   : > { %751 = vst [vmem:[%s1515_s23 + $0x340] sm:$0xff] %v239_v40  ;;  %v303_v40 = vld [vmem:[%s1506_s22 + $0x540] sm:$0xff] }
  0x92   : > { %752 = vst [vmem:[%s1515_s23 + $0x348] sm:$0xff] %v240_v41  ;;  %v304_v41 = vld [vmem:[%s1506_s22 + $0x548] sm:$0xff] }
  0x93   : > { %753 = vst [vmem:[%s1515_s23 + $0x350] sm:$0xff] %v241_v42  ;;  %v305_v42 = vld [vmem:[%s1506_s22 + $0x550] sm:$0xff] }
  0x94   : > { %754 = vst [vmem:[%s1515_s23 + $0x358] sm:$0xff] %v242_v43  ;;  %v306_v43 = vld [vmem:[%s1506_s22 + $0x558] sm:$0xff] }
  0x95   : > { %755 = vst [vmem:[%s1515_s23 + $0x360] sm:$0xff] %v243_v44  ;;  %v307_v44 = vld [vmem:[%s1506_s22 + $0x560] sm:$0xff] }
  0x96   : > { %756 = vst [vmem:[%s1515_s23 + $0x368] sm:$0xff] %v244_v45  ;;  %v308_v45 = vld [vmem:[%s1506_s22 + $0x568] sm:$0xff] }
  0x97   : > { %757 = vst [vmem:[%s1515_s23 + $0x370] sm:$0xff] %v245_v46  ;;  %v309_v46 = vld [vmem:[%s1506_s22 + $0x570] sm:$0xff] }
  0x98   : > { %758 = vst [vmem:[%s1515_s23 + $0x378] sm:$0xff] %v246_v47  ;;  %v310_v47 = vld [vmem:[%s1506_s22 + $0x578] sm:$0xff] }
  0x99   : > { %759 = vst [vmem:[%s1515_s23 + $0x380] sm:$0xff] %v247_v48  ;;  %v311_v48 = vld [vmem:[%s1506_s22 + $0x580] sm:$0xff] }
  0x9a   : > { %760 = vst [vmem:[%s1515_s23 + $0x388] sm:$0xff] %v248_v49  ;;  %v312_v49 = vld [vmem:[%s1506_s22 + $0x588] sm:$0xff] }
  0x9b   : > { %761 = vst [vmem:[%s1515_s23 + $0x390] sm:$0xff] %v249_v50  ;;  %v313_v50 = vld [vmem:[%s1506_s22 + $0x590] sm:$0xff] }
  0x9c   : > { %762 = vst [vmem:[%s1515_s23 + $0x398] sm:$0xff] %v250_v51  ;;  %v314_v51 = vld [vmem:[%s1506_s22 + $0x598] sm:$0xff] }
  0x9d   : > { %763 = vst [vmem:[%s1515_s23 + $0x3a0] sm:$0xff] %v251_v52  ;;  %v315_v52 = vld [vmem:[%s1506_s22 + $0x5a0] sm:$0xff] }
  0x9e   : > { %764 = vst [vmem:[%s1515_s23 + $0x3a8] sm:$0xff] %v252_v53  ;;  %v316_v53 = vld [vmem:[%s1506_s22 + $0x5a8] sm:$0xff] }
  0x9f   : > { %765 = vst [vmem:[%s1515_s23 + $0x3b0] sm:$0xff] %v253_v54  ;;  %v317_v54 = vld [vmem:[%s1506_s22 + $0x5b0] sm:$0xff] }
  0xa0   : > { %766 = vst [vmem:[%s1515_s23 + $0x3b8] sm:$0xff] %v254_v55  ;;  %v318_v55 = vld [vmem:[%s1506_s22 + $0x5b8] sm:$0xff] }
  0xa1   : > { %767 = vst [vmem:[%s1515_s23 + $0x3c0] sm:$0xff] %v255_v56  ;;  %v319_v56 = vld [vmem:[%s1506_s22 + $0x5c0] sm:$0xff] }
  0xa2   : > { %768 = vst [vmem:[%s1515_s23 + $0x3c8] sm:$0xff] %v256_v57  ;;  %v320_v57 = vld [vmem:[%s1506_s22 + $0x5c8] sm:$0xff] }
  0xa3   : > { %769 = vst [vmem:[%s1515_s23 + $0x3d0] sm:$0xff] %v257_v58  ;;  %v321_v58 = vld [vmem:[%s1506_s22 + $0x5d0] sm:$0xff] }
  0xa4   : > { %770 = vst [vmem:[%s1515_s23 + $0x3d8] sm:$0xff] %v258_v59  ;;  %v322_v59 = vld [vmem:[%s1506_s22 + $0x5d8] sm:$0xff] }
  0xa5   : > { %771 = vst [vmem:[%s1515_s23 + $0x3e0] sm:$0xff] %v259_v60  ;;  %v323_v60 = vld [vmem:[%s1506_s22 + $0x5e0] sm:$0xff] }
  0xa6   : > { %772 = vst [vmem:[%s1515_s23 + $0x3e8] sm:$0xff] %v260_v61  ;;  %v324_v61 = vld [vmem:[%s1506_s22 + $0x5e8] sm:$0xff] }
  0xa7   : > { %773 = vst [vmem:[%s1515_s23 + $0x3f0] sm:$0xff] %v261_v62  ;;  %v325_v62 = vld [vmem:[%s1506_s22 + $0x5f0] sm:$0xff] }
  0xa8   : > { %774 = vst [vmem:[%s1515_s23 + $0x3f8] sm:$0xff] %v262_v63  ;;  %v326_v63 = vld [vmem:[%s1506_s22 + $0x5f8] sm:$0xff] }
  0xa9   : > { %775 = vst [vmem:[%s1515_s23 + $0x400] sm:$0xff] %v263_v0  ;;  %v327_v0 = vld [vmem:[%s1506_s22 + $0x600] sm:$0xff] }
  0xaa   : > { %776 = vst [vmem:[%s1515_s23 + $0x408] sm:$0xff] %v264_v1  ;;  %v328_v1 = vld [vmem:[%s1506_s22 + $0x608] sm:$0xff] }
  0xab   : > { %777 = vst [vmem:[%s1515_s23 + $0x410] sm:$0xff] %v265_v2  ;;  %v329_v2 = vld [vmem:[%s1506_s22 + $0x610] sm:$0xff] }
  0xac   : > { %778 = vst [vmem:[%s1515_s23 + $0x418] sm:$0xff] %v266_v3  ;;  %v330_v3 = vld [vmem:[%s1506_s22 + $0x618] sm:$0xff] }
  0xad   : > { %779 = vst [vmem:[%s1515_s23 + $0x420] sm:$0xff] %v267_v4  ;;  %v331_v4 = vld [vmem:[%s1506_s22 + $0x620] sm:$0xff] }
  0xae   : > { %780 = vst [vmem:[%s1515_s23 + $0x428] sm:$0xff] %v268_v5  ;;  %v332_v5 = vld [vmem:[%s1506_s22 + $0x628] sm:$0xff] }
  0xaf   : > { %781 = vst [vmem:[%s1515_s23 + $0x430] sm:$0xff] %v269_v6  ;;  %v333_v6 = vld [vmem:[%s1506_s22 + $0x630] sm:$0xff] }
  0xb0   : > { %782 = vst [vmem:[%s1515_s23 + $0x438] sm:$0xff] %v270_v7  ;;  %v334_v7 = vld [vmem:[%s1506_s22 + $0x638] sm:$0xff] }
  0xb1   : > { %783 = vst [vmem:[%s1515_s23 + $0x440] sm:$0xff] %v271_v8  ;;  %v335_v8 = vld [vmem:[%s1506_s22 + $0x640] sm:$0xff] }
  0xb2   : > { %784 = vst [vmem:[%s1515_s23 + $0x448] sm:$0xff] %v272_v9  ;;  %v336_v9 = vld [vmem:[%s1506_s22 + $0x648] sm:$0xff] }
  0xb3   : > { %785 = vst [vmem:[%s1515_s23 + $0x450] sm:$0xff] %v273_v10  ;;  %v337_v10 = vld [vmem:[%s1506_s22 + $0x650] sm:$0xff] }
  0xb4   : > { %786 = vst [vmem:[%s1515_s23 + $0x458] sm:$0xff] %v274_v11  ;;  %v338_v11 = vld [vmem:[%s1506_s22 + $0x658] sm:$0xff] }
  0xb5   : > { %787 = vst [vmem:[%s1515_s23 + $0x460] sm:$0xff] %v275_v12  ;;  %v339_v12 = vld [vmem:[%s1506_s22 + $0x660] sm:$0xff] }
  0xb6   : > { %788 = vst [vmem:[%s1515_s23 + $0x468] sm:$0xff] %v276_v13  ;;  %v340_v13 = vld [vmem:[%s1506_s22 + $0x668] sm:$0xff] }
  0xb7   : > { %789 = vst [vmem:[%s1515_s23 + $0x470] sm:$0xff] %v277_v14  ;;  %v341_v14 = vld [vmem:[%s1506_s22 + $0x670] sm:$0xff] }
  0xb8   : > { %790 = vst [vmem:[%s1515_s23 + $0x478] sm:$0xff] %v278_v15  ;;  %v342_v15 = vld [vmem:[%s1506_s22 + $0x678] sm:$0xff] }
  0xb9   : > { %791 = vst [vmem:[%s1515_s23 + $0x480] sm:$0xff] %v279_v16  ;;  %v343_v16 = vld [vmem:[%s1506_s22 + $0x680] sm:$0xff] }
  0xba   : > { %792 = vst [vmem:[%s1515_s23 + $0x488] sm:$0xff] %v280_v17  ;;  %v344_v17 = vld [vmem:[%s1506_s22 + $0x688] sm:$0xff] }
  0xbb   : > { %793 = vst [vmem:[%s1515_s23 + $0x490] sm:$0xff] %v281_v18  ;;  %v345_v18 = vld [vmem:[%s1506_s22 + $0x690] sm:$0xff] }
  0xbc   : > { %794 = vst [vmem:[%s1515_s23 + $0x498] sm:$0xff] %v282_v19  ;;  %v346_v19 = vld [vmem:[%s1506_s22 + $0x698] sm:$0xff] }
  0xbd   : > { %795 = vst [vmem:[%s1515_s23 + $0x4a0] sm:$0xff] %v283_v20  ;;  %v347_v20 = vld [vmem:[%s1506_s22 + $0x6a0] sm:$0xff] }
  0xbe   : > { %796 = vst [vmem:[%s1515_s23 + $0x4a8] sm:$0xff] %v284_v21  ;;  %v348_v21 = vld [vmem:[%s1506_s22 + $0x6a8] sm:$0xff] }
  0xbf   : > { %797 = vst [vmem:[%s1515_s23 + $0x4b0] sm:$0xff] %v285_v22  ;;  %v349_v22 = vld [vmem:[%s1506_s22 + $0x6b0] sm:$0xff] }
  0xc0   : > { %798 = vst [vmem:[%s1515_s23 + $0x4b8] sm:$0xff] %v286_v23  ;;  %v350_v23 = vld [vmem:[%s1506_s22 + $0x6b8] sm:$0xff] }
  0xc1   : > { %799 = vst [vmem:[%s1515_s23 + $0x4c0] sm:$0xff] %v287_v24  ;;  %v351_v24 = vld [vmem:[%s1506_s22 + $0x6c0] sm:$0xff] }
  0xc2   : > { %800 = vst [vmem:[%s1515_s23 + $0x4c8] sm:$0xff] %v288_v25  ;;  %v352_v25 = vld [vmem:[%s1506_s22 + $0x6c8] sm:$0xff] }
  0xc3   : > { %801 = vst [vmem:[%s1515_s23 + $0x4d0] sm:$0xff] %v289_v26  ;;  %v353_v26 = vld [vmem:[%s1506_s22 + $0x6d0] sm:$0xff] }
  0xc4   : > { %802 = vst [vmem:[%s1515_s23 + $0x4d8] sm:$0xff] %v290_v27  ;;  %v354_v27 = vld [vmem:[%s1506_s22 + $0x6d8] sm:$0xff] }
  0xc5   : > { %803 = vst [vmem:[%s1515_s23 + $0x4e0] sm:$0xff] %v291_v28  ;;  %v355_v28 = vld [vmem:[%s1506_s22 + $0x6e0] sm:$0xff] }
  0xc6   : > { %804 = vst [vmem:[%s1515_s23 + $0x4e8] sm:$0xff] %v292_v29  ;;  %v356_v29 = vld [vmem:[%s1506_s22 + $0x6e8] sm:$0xff] }
  0xc7   : > { %805 = vst [vmem:[%s1515_s23 + $0x4f0] sm:$0xff] %v293_v30  ;;  %v357_v30 = vld [vmem:[%s1506_s22 + $0x6f0] sm:$0xff] }
  0xc8   : > { %806 = vst [vmem:[%s1515_s23 + $0x4f8] sm:$0xff] %v294_v31  ;;  %v358_v31 = vld [vmem:[%s1506_s22 + $0x6f8] sm:$0xff] }
  0xc9   : > { %807 = vst [vmem:[%s1515_s23 + $0x500] sm:$0xff] %v295_v32  ;;  %v359_v32 = vld [vmem:[%s1506_s22 + $0x700] sm:$0xff] }
  0xca   : > { %808 = vst [vmem:[%s1515_s23 + $0x508] sm:$0xff] %v296_v33  ;;  %v360_v33 = vld [vmem:[%s1506_s22 + $0x708] sm:$0xff] }
  0xcb   : > { %809 = vst [vmem:[%s1515_s23 + $0x510] sm:$0xff] %v297_v34  ;;  %v361_v34 = vld [vmem:[%s1506_s22 + $0x710] sm:$0xff] }
  0xcc   : > { %810 = vst [vmem:[%s1515_s23 + $0x518] sm:$0xff] %v298_v35  ;;  %v362_v35 = vld [vmem:[%s1506_s22 + $0x718] sm:$0xff] }
  0xcd   : > { %811 = vst [vmem:[%s1515_s23 + $0x520] sm:$0xff] %v299_v36  ;;  %v363_v36 = vld [vmem:[%s1506_s22 + $0x720] sm:$0xff] }
  0xce   : > { %812 = vst [vmem:[%s1515_s23 + $0x528] sm:$0xff] %v300_v37  ;;  %v364_v37 = vld [vmem:[%s1506_s22 + $0x728] sm:$0xff] }
  0xcf   : > { %813 = vst [vmem:[%s1515_s23 + $0x530] sm:$0xff] %v301_v38  ;;  %v365_v38 = vld [vmem:[%s1506_s22 + $0x730] sm:$0xff] }
  0xd0   : > { %814 = vst [vmem:[%s1515_s23 + $0x538] sm:$0xff] %v302_v39  ;;  %v366_v39 = vld [vmem:[%s1506_s22 + $0x738] sm:$0xff] }
  0xd1   : > { %815 = vst [vmem:[%s1515_s23 + $0x540] sm:$0xff] %v303_v40  ;;  %v367_v40 = vld [vmem:[%s1506_s22 + $0x740] sm:$0xff] }
  0xd2   : > { %816 = vst [vmem:[%s1515_s23 + $0x548] sm:$0xff] %v304_v41  ;;  %v368_v41 = vld [vmem:[%s1506_s22 + $0x748] sm:$0xff] }
  0xd3   : > { %817 = vst [vmem:[%s1515_s23 + $0x550] sm:$0xff] %v305_v42  ;;  %v369_v42 = vld [vmem:[%s1506_s22 + $0x750] sm:$0xff] }
  0xd4   : > { %818 = vst [vmem:[%s1515_s23 + $0x558] sm:$0xff] %v306_v43  ;;  %v370_v43 = vld [vmem:[%s1506_s22 + $0x758] sm:$0xff] }
  0xd5   : > { %819 = vst [vmem:[%s1515_s23 + $0x560] sm:$0xff] %v307_v44  ;;  %v371_v44 = vld [vmem:[%s1506_s22 + $0x760] sm:$0xff] }
  0xd6   : > { %820 = vst [vmem:[%s1515_s23 + $0x568] sm:$0xff] %v308_v45  ;;  %v372_v45 = vld [vmem:[%s1506_s22 + $0x768] sm:$0xff] }
  0xd7   : > { %821 = vst [vmem:[%s1515_s23 + $0x570] sm:$0xff] %v309_v46  ;;  %v373_v46 = vld [vmem:[%s1506_s22 + $0x770] sm:$0xff] }
  0xd8   : > { %822 = vst [vmem:[%s1515_s23 + $0x578] sm:$0xff] %v310_v47  ;;  %v374_v47 = vld [vmem:[%s1506_s22 + $0x778] sm:$0xff] }
  0xd9   : > { %823 = vst [vmem:[%s1515_s23 + $0x580] sm:$0xff] %v311_v48  ;;  %v375_v48 = vld [vmem:[%s1506_s22 + $0x780] sm:$0xff] }
  0xda   : > { %824 = vst [vmem:[%s1515_s23 + $0x588] sm:$0xff] %v312_v49  ;;  %v376_v49 = vld [vmem:[%s1506_s22 + $0x788] sm:$0xff] }
  0xdb   : > { %825 = vst [vmem:[%s1515_s23 + $0x590] sm:$0xff] %v313_v50  ;;  %v377_v50 = vld [vmem:[%s1506_s22 + $0x790] sm:$0xff] }
  0xdc   : > { %826 = vst [vmem:[%s1515_s23 + $0x598] sm:$0xff] %v314_v51  ;;  %v378_v51 = vld [vmem:[%s1506_s22 + $0x798] sm:$0xff] }
  0xdd   : > { %827 = vst [vmem:[%s1515_s23 + $0x5a0] sm:$0xff] %v315_v52  ;;  %v379_v52 = vld [vmem:[%s1506_s22 + $0x7a0] sm:$0xff] }
  0xde   : > { %828 = vst [vmem:[%s1515_s23 + $0x5a8] sm:$0xff] %v316_v53  ;;  %v380_v53 = vld [vmem:[%s1506_s22 + $0x7a8] sm:$0xff] }
  0xdf   : > { %829 = vst [vmem:[%s1515_s23 + $0x5b0] sm:$0xff] %v317_v54  ;;  %v381_v54 = vld [vmem:[%s1506_s22 + $0x7b0] sm:$0xff] }
  0xe0   : > { %830 = vst [vmem:[%s1515_s23 + $0x5b8] sm:$0xff] %v318_v55  ;;  %v382_v55 = vld [vmem:[%s1506_s22 + $0x7b8] sm:$0xff] }
  0xe1   : > { %831 = vst [vmem:[%s1515_s23 + $0x5c0] sm:$0xff] %v319_v56  ;;  %v383_v56 = vld [vmem:[%s1506_s22 + $0x7c0] sm:$0xff] }
  0xe2   : > { %832 = vst [vmem:[%s1515_s23 + $0x5c8] sm:$0xff] %v320_v57  ;;  %v384_v57 = vld [vmem:[%s1506_s22 + $0x7c8] sm:$0xff] }
  0xe3   : > { %833 = vst [vmem:[%s1515_s23 + $0x5d0] sm:$0xff] %v321_v58  ;;  %v385_v58 = vld [vmem:[%s1506_s22 + $0x7d0] sm:$0xff] }
  0xe4   : > { %834 = vst [vmem:[%s1515_s23 + $0x5d8] sm:$0xff] %v322_v59  ;;  %v386_v59 = vld [vmem:[%s1506_s22 + $0x7d8] sm:$0xff] }
  0xe5   : > { %835 = vst [vmem:[%s1515_s23 + $0x5e0] sm:$0xff] %v323_v60  ;;  %v387_v60 = vld [vmem:[%s1506_s22 + $0x7e0] sm:$0xff] }
  0xe6   : > { %836 = vst [vmem:[%s1515_s23 + $0x5e8] sm:$0xff] %v324_v61  ;;  %v388_v61 = vld [vmem:[%s1506_s22 + $0x7e8] sm:$0xff] }
  0xe7   : > { %837 = vst [vmem:[%s1515_s23 + $0x5f0] sm:$0xff] %v325_v62  ;;  %v389_v62 = vld [vmem:[%s1506_s22 + $0x7f0] sm:$0xff] }
  0xe8   : > { %838 = vst [vmem:[%s1515_s23 + $0x5f8] sm:$0xff] %v326_v63  ;;  %v390_v63 = vld [vmem:[%s1506_s22 + $0x7f8] sm:$0xff] }
  0xe9   : > { %839 = vst [vmem:[%s1515_s23 + $0x600] sm:$0xff] %v327_v0  ;;  %v391_v0 = vld [vmem:[%s1506_s22 + $0x800] sm:$0xff] }
  0xea   : > { %840 = vst [vmem:[%s1515_s23 + $0x608] sm:$0xff] %v328_v1  ;;  %v392_v1 = vld [vmem:[%s1506_s22 + $0x808] sm:$0xff] }
  0xeb   : > { %841 = vst [vmem:[%s1515_s23 + $0x610] sm:$0xff] %v329_v2  ;;  %v393_v2 = vld [vmem:[%s1506_s22 + $0x810] sm:$0xff] }
  0xec   : > { %842 = vst [vmem:[%s1515_s23 + $0x618] sm:$0xff] %v330_v3  ;;  %v394_v3 = vld [vmem:[%s1506_s22 + $0x818] sm:$0xff] }
  0xed   : > { %843 = vst [vmem:[%s1515_s23 + $0x620] sm:$0xff] %v331_v4  ;;  %v395_v4 = vld [vmem:[%s1506_s22 + $0x820] sm:$0xff] }
  0xee   : > { %844 = vst [vmem:[%s1515_s23 + $0x628] sm:$0xff] %v332_v5  ;;  %v396_v5 = vld [vmem:[%s1506_s22 + $0x828] sm:$0xff] }
  0xef   : > { %845 = vst [vmem:[%s1515_s23 + $0x630] sm:$0xff] %v333_v6  ;;  %v397_v6 = vld [vmem:[%s1506_s22 + $0x830] sm:$0xff] }
  0xf0   : > { %846 = vst [vmem:[%s1515_s23 + $0x638] sm:$0xff] %v334_v7  ;;  %v398_v7 = vld [vmem:[%s1506_s22 + $0x838] sm:$0xff] }
  0xf1   : > { %847 = vst [vmem:[%s1515_s23 + $0x640] sm:$0xff] %v335_v8  ;;  %v399_v8 = vld [vmem:[%s1506_s22 + $0x840] sm:$0xff] }
  0xf2   : > { %848 = vst [vmem:[%s1515_s23 + $0x648] sm:$0xff] %v336_v9  ;;  %v400_v9 = vld [vmem:[%s1506_s22 + $0x848] sm:$0xff] }
  0xf3   : > { %849 = vst [vmem:[%s1515_s23 + $0x650] sm:$0xff] %v337_v10  ;;  %v401_v10 = vld [vmem:[%s1506_s22 + $0x850] sm:$0xff] }
  0xf4   : > { %850 = vst [vmem:[%s1515_s23 + $0x658] sm:$0xff] %v338_v11  ;;  %v402_v11 = vld [vmem:[%s1506_s22 + $0x858] sm:$0xff] }
  0xf5   : > { %851 = vst [vmem:[%s1515_s23 + $0x660] sm:$0xff] %v339_v12  ;;  %v403_v12 = vld [vmem:[%s1506_s22 + $0x860] sm:$0xff] }
  0xf6   : > { %852 = vst [vmem:[%s1515_s23 + $0x668] sm:$0xff] %v340_v13  ;;  %v404_v13 = vld [vmem:[%s1506_s22 + $0x868] sm:$0xff] }
  0xf7   : > { %853 = vst [vmem:[%s1515_s23 + $0x670] sm:$0xff] %v341_v14  ;;  %v405_v14 = vld [vmem:[%s1506_s22 + $0x870] sm:$0xff] }
  0xf8   : > { %854 = vst [vmem:[%s1515_s23 + $0x678] sm:$0xff] %v342_v15  ;;  %v406_v15 = vld [vmem:[%s1506_s22 + $0x878] sm:$0xff] }
  0xf9   : > { %855 = vst [vmem:[%s1515_s23 + $0x680] sm:$0xff] %v343_v16  ;;  %v407_v16 = vld [vmem:[%s1506_s22 + $0x880] sm:$0xff] }
  0xfa   : > { %856 = vst [vmem:[%s1515_s23 + $0x688] sm:$0xff] %v344_v17  ;;  %v408_v17 = vld [vmem:[%s1506_s22 + $0x888] sm:$0xff] }
  0xfb   : > { %857 = vst [vmem:[%s1515_s23 + $0x690] sm:$0xff] %v345_v18  ;;  %v409_v18 = vld [vmem:[%s1506_s22 + $0x890] sm:$0xff] }
  0xfc   : > { %858 = vst [vmem:[%s1515_s23 + $0x698] sm:$0xff] %v346_v19  ;;  %v410_v19 = vld [vmem:[%s1506_s22 + $0x898] sm:$0xff] }
  0xfd   : > { %859 = vst [vmem:[%s1515_s23 + $0x6a0] sm:$0xff] %v347_v20  ;;  %v411_v20 = vld [vmem:[%s1506_s22 + $0x8a0] sm:$0xff] }
  0xfe   : > { %860 = vst [vmem:[%s1515_s23 + $0x6a8] sm:$0xff] %v348_v21  ;;  %v412_v21 = vld [vmem:[%s1506_s22 + $0x8a8] sm:$0xff] }
  0xff   : > { %861 = vst [vmem:[%s1515_s23 + $0x6b0] sm:$0xff] %v349_v22  ;;  %v413_v22 = vld [vmem:[%s1506_s22 + $0x8b0] sm:$0xff] }
 0x100   : > { %862 = vst [vmem:[%s1515_s23 + $0x6b8] sm:$0xff] %v350_v23  ;;  %v414_v23 = vld [vmem:[%s1506_s22 + $0x8b8] sm:$0xff] }
 0x101   : > { %863 = vst [vmem:[%s1515_s23 + $0x6c0] sm:$0xff] %v351_v24  ;;  %v415_v24 = vld [vmem:[%s1506_s22 + $0x8c0] sm:$0xff] }
 0x102   : > { %864 = vst [vmem:[%s1515_s23 + $0x6c8] sm:$0xff] %v352_v25  ;;  %v416_v25 = vld [vmem:[%s1506_s22 + $0x8c8] sm:$0xff] }
 0x103   : > { %865 = vst [vmem:[%s1515_s23 + $0x6d0] sm:$0xff] %v353_v26  ;;  %v417_v26 = vld [vmem:[%s1506_s22 + $0x8d0] sm:$0xff] }
 0x104   : > { %866 = vst [vmem:[%s1515_s23 + $0x6d8] sm:$0xff] %v354_v27  ;;  %v418_v27 = vld [vmem:[%s1506_s22 + $0x8d8] sm:$0xff] }
 0x105   : > { %867 = vst [vmem:[%s1515_s23 + $0x6e0] sm:$0xff] %v355_v28  ;;  %v419_v28 = vld [vmem:[%s1506_s22 + $0x8e0] sm:$0xff] }
 0x106   : > { %868 = vst [vmem:[%s1515_s23 + $0x6e8] sm:$0xff] %v356_v29  ;;  %v420_v29 = vld [vmem:[%s1506_s22 + $0x8e8] sm:$0xff] }
 0x107   : > { %869 = vst [vmem:[%s1515_s23 + $0x6f0] sm:$0xff] %v357_v30  ;;  %v421_v30 = vld [vmem:[%s1506_s22 + $0x8f0] sm:$0xff] }
 0x108   : > { %870 = vst [vmem:[%s1515_s23 + $0x6f8] sm:$0xff] %v358_v31  ;;  %v422_v31 = vld [vmem:[%s1506_s22 + $0x8f8] sm:$0xff] }
 0x109   : > { %871 = vst [vmem:[%s1515_s23 + $0x700] sm:$0xff] %v359_v32  ;;  %v423_v32 = vld [vmem:[%s1506_s22 + $0x900] sm:$0xff] }
 0x10a   : > { %872 = vst [vmem:[%s1515_s23 + $0x708] sm:$0xff] %v360_v33  ;;  %v424_v33 = vld [vmem:[%s1506_s22 + $0x908] sm:$0xff] }
 0x10b   : > { %873 = vst [vmem:[%s1515_s23 + $0x710] sm:$0xff] %v361_v34  ;;  %v425_v34 = vld [vmem:[%s1506_s22 + $0x910] sm:$0xff] }
 0x10c   : > { %874 = vst [vmem:[%s1515_s23 + $0x718] sm:$0xff] %v362_v35  ;;  %v426_v35 = vld [vmem:[%s1506_s22 + $0x918] sm:$0xff] }
 0x10d   : > { %875 = vst [vmem:[%s1515_s23 + $0x720] sm:$0xff] %v363_v36  ;;  %v427_v36 = vld [vmem:[%s1506_s22 + $0x920] sm:$0xff] }
 0x10e   : > { %876 = vst [vmem:[%s1515_s23 + $0x728] sm:$0xff] %v364_v37  ;;  %v428_v37 = vld [vmem:[%s1506_s22 + $0x928] sm:$0xff] }
 0x10f   : > { %877 = vst [vmem:[%s1515_s23 + $0x730] sm:$0xff] %v365_v38  ;;  %v429_v38 = vld [vmem:[%s1506_s22 + $0x930] sm:$0xff] }
 0x110   : > { %878 = vst [vmem:[%s1515_s23 + $0x738] sm:$0xff] %v366_v39  ;;  %v430_v39 = vld [vmem:[%s1506_s22 + $0x938] sm:$0xff] }
 0x111   : > { %879 = vst [vmem:[%s1515_s23 + $0x740] sm:$0xff] %v367_v40  ;;  %v431_v40 = vld [vmem:[%s1506_s22 + $0x940] sm:$0xff] }
 0x112   : > { %880 = vst [vmem:[%s1515_s23 + $0x748] sm:$0xff] %v368_v41  ;;  %v432_v41 = vld [vmem:[%s1506_s22 + $0x948] sm:$0xff] }
 0x113   : > { %881 = vst [vmem:[%s1515_s23 + $0x750] sm:$0xff] %v369_v42  ;;  %v433_v42 = vld [vmem:[%s1506_s22 + $0x950] sm:$0xff] }
 0x114   : > { %882 = vst [vmem:[%s1515_s23 + $0x758] sm:$0xff] %v370_v43  ;;  %v434_v43 = vld [vmem:[%s1506_s22 + $0x958] sm:$0xff] }
 0x115   : > { %883 = vst [vmem:[%s1515_s23 + $0x760] sm:$0xff] %v371_v44  ;;  %v435_v44 = vld [vmem:[%s1506_s22 + $0x960] sm:$0xff] }
 0x116   : > { %884 = vst [vmem:[%s1515_s23 + $0x768] sm:$0xff] %v372_v45  ;;  %v436_v45 = vld [vmem:[%s1506_s22 + $0x968] sm:$0xff] }
 0x117   : > { %885 = vst [vmem:[%s1515_s23 + $0x770] sm:$0xff] %v373_v46  ;;  %v437_v46 = vld [vmem:[%s1506_s22 + $0x970] sm:$0xff] }
 0x118   : > { %886 = vst [vmem:[%s1515_s23 + $0x778] sm:$0xff] %v374_v47  ;;  %v438_v47 = vld [vmem:[%s1506_s22 + $0x978] sm:$0xff] }
 0x119   : > { %887 = vst [vmem:[%s1515_s23 + $0x780] sm:$0xff] %v375_v48  ;;  %v439_v48 = vld [vmem:[%s1506_s22 + $0x980] sm:$0xff] }
 0x11a   : > { %888 = vst [vmem:[%s1515_s23 + $0x788] sm:$0xff] %v376_v49  ;;  %v440_v49 = vld [vmem:[%s1506_s22 + $0x988] sm:$0xff] }
 0x11b   : > { %889 = vst [vmem:[%s1515_s23 + $0x790] sm:$0xff] %v377_v50  ;;  %v441_v50 = vld [vmem:[%s1506_s22 + $0x990] sm:$0xff] }
 0x11c   : > { %890 = vst [vmem:[%s1515_s23 + $0x798] sm:$0xff] %v378_v51  ;;  %v442_v51 = vld [vmem:[%s1506_s22 + $0x998] sm:$0xff] }
 0x11d   : > { %891 = vst [vmem:[%s1515_s23 + $0x7a0] sm:$0xff] %v379_v52  ;;  %v443_v52 = vld [vmem:[%s1506_s22 + $0x9a0] sm:$0xff] }
 0x11e   : > { %892 = vst [vmem:[%s1515_s23 + $0x7a8] sm:$0xff] %v380_v53  ;;  %v444_v53 = vld [vmem:[%s1506_s22 + $0x9a8] sm:$0xff] }
 0x11f   : > { %893 = vst [vmem:[%s1515_s23 + $0x7b0] sm:$0xff] %v381_v54  ;;  %v445_v54 = vld [vmem:[%s1506_s22 + $0x9b0] sm:$0xff] }
 0x120   : > { %894 = vst [vmem:[%s1515_s23 + $0x7b8] sm:$0xff] %v382_v55  ;;  %v446_v55 = vld [vmem:[%s1506_s22 + $0x9b8] sm:$0xff] }
 0x121   : > { %895 = vst [vmem:[%s1515_s23 + $0x7c0] sm:$0xff] %v383_v56  ;;  %v447_v56 = vld [vmem:[%s1506_s22 + $0x9c0] sm:$0xff] }
 0x122   : > { %896 = vst [vmem:[%s1515_s23 + $0x7c8] sm:$0xff] %v384_v57  ;;  %v448_v57 = vld [vmem:[%s1506_s22 + $0x9c8] sm:$0xff] }
 0x123   : > { %897 = vst [vmem:[%s1515_s23 + $0x7d0] sm:$0xff] %v385_v58  ;;  %v449_v58 = vld [vmem:[%s1506_s22 + $0x9d0] sm:$0xff] }
 0x124   : > { %898 = vst [vmem:[%s1515_s23 + $0x7d8] sm:$0xff] %v386_v59  ;;  %v450_v59 = vld [vmem:[%s1506_s22 + $0x9d8] sm:$0xff] }
 0x125   : > { %899 = vst [vmem:[%s1515_s23 + $0x7e0] sm:$0xff] %v387_v60  ;;  %v451_v60 = vld [vmem:[%s1506_s22 + $0x9e0] sm:$0xff] }
 0x126   : > { %900 = vst [vmem:[%s1515_s23 + $0x7e8] sm:$0xff] %v388_v61  ;;  %v452_v61 = vld [vmem:[%s1506_s22 + $0x9e8] sm:$0xff] }
 0x127   : > { %901 = vst [vmem:[%s1515_s23 + $0x7f0] sm:$0xff] %v389_v62  ;;  %v453_v62 = vld [vmem:[%s1506_s22 + $0x9f0] sm:$0xff] }
 0x128   : > { %902 = vst [vmem:[%s1515_s23 + $0x7f8] sm:$0xff] %v390_v63  ;;  %v454_v63 = vld [vmem:[%s1506_s22 + $0x9f8] sm:$0xff] }
 0x129   : > { %903 = vst [vmem:[%s1515_s23 + $0x800] sm:$0xff] %v391_v0  ;;  %v455_v0 = vld [vmem:[%s1506_s22 + $0xa00] sm:$0xff] }
 0x12a   : > { %904 = vst [vmem:[%s1515_s23 + $0x808] sm:$0xff] %v392_v1  ;;  %v456_v1 = vld [vmem:[%s1506_s22 + $0xa08] sm:$0xff] }
 0x12b   : > { %905 = vst [vmem:[%s1515_s23 + $0x810] sm:$0xff] %v393_v2  ;;  %v457_v2 = vld [vmem:[%s1506_s22 + $0xa10] sm:$0xff] }
 0x12c   : > { %906 = vst [vmem:[%s1515_s23 + $0x818] sm:$0xff] %v394_v3  ;;  %v458_v3 = vld [vmem:[%s1506_s22 + $0xa18] sm:$0xff] }
 0x12d   : > { %907 = vst [vmem:[%s1515_s23 + $0x820] sm:$0xff] %v395_v4  ;;  %v459_v4 = vld [vmem:[%s1506_s22 + $0xa20] sm:$0xff] }
 0x12e   : > { %908 = vst [vmem:[%s1515_s23 + $0x828] sm:$0xff] %v396_v5  ;;  %v460_v5 = vld [vmem:[%s1506_s22 + $0xa28] sm:$0xff] }
 0x12f   : > { %909 = vst [vmem:[%s1515_s23 + $0x830] sm:$0xff] %v397_v6  ;;  %v461_v6 = vld [vmem:[%s1506_s22 + $0xa30] sm:$0xff] }
 0x130   : > { %910 = vst [vmem:[%s1515_s23 + $0x838] sm:$0xff] %v398_v7  ;;  %v462_v7 = vld [vmem:[%s1506_s22 + $0xa38] sm:$0xff] }
 0x131   : > { %911 = vst [vmem:[%s1515_s23 + $0x840] sm:$0xff] %v399_v8  ;;  %v463_v8 = vld [vmem:[%s1506_s22 + $0xa40] sm:$0xff] }
 0x132   : > { %912 = vst [vmem:[%s1515_s23 + $0x848] sm:$0xff] %v400_v9  ;;  %v464_v9 = vld [vmem:[%s1506_s22 + $0xa48] sm:$0xff] }
 0x133   : > { %913 = vst [vmem:[%s1515_s23 + $0x850] sm:$0xff] %v401_v10  ;;  %v465_v10 = vld [vmem:[%s1506_s22 + $0xa50] sm:$0xff] }
 0x134   : > { %914 = vst [vmem:[%s1515_s23 + $0x858] sm:$0xff] %v402_v11  ;;  %v466_v11 = vld [vmem:[%s1506_s22 + $0xa58] sm:$0xff] }
 0x135   : > { %915 = vst [vmem:[%s1515_s23 + $0x860] sm:$0xff] %v403_v12  ;;  %v467_v12 = vld [vmem:[%s1506_s22 + $0xa60] sm:$0xff] }
 0x136   : > { %916 = vst [vmem:[%s1515_s23 + $0x868] sm:$0xff] %v404_v13  ;;  %v468_v13 = vld [vmem:[%s1506_s22 + $0xa68] sm:$0xff] }
 0x137   : > { %917 = vst [vmem:[%s1515_s23 + $0x870] sm:$0xff] %v405_v14  ;;  %v469_v14 = vld [vmem:[%s1506_s22 + $0xa70] sm:$0xff] }
 0x138   : > { %918 = vst [vmem:[%s1515_s23 + $0x878] sm:$0xff] %v406_v15  ;;  %v470_v15 = vld [vmem:[%s1506_s22 + $0xa78] sm:$0xff] }
 0x139   : > { %919 = vst [vmem:[%s1515_s23 + $0x880] sm:$0xff] %v407_v16  ;;  %v471_v16 = vld [vmem:[%s1506_s22 + $0xa80] sm:$0xff] }
 0x13a   : > { %920 = vst [vmem:[%s1515_s23 + $0x888] sm:$0xff] %v408_v17  ;;  %v472_v17 = vld [vmem:[%s1506_s22 + $0xa88] sm:$0xff] }
 0x13b   : > { %921 = vst [vmem:[%s1515_s23 + $0x890] sm:$0xff] %v409_v18  ;;  %v473_v18 = vld [vmem:[%s1506_s22 + $0xa90] sm:$0xff] }
 0x13c   : > { %922 = vst [vmem:[%s1515_s23 + $0x898] sm:$0xff] %v410_v19  ;;  %v474_v19 = vld [vmem:[%s1506_s22 + $0xa98] sm:$0xff] }
 0x13d   : > { %923 = vst [vmem:[%s1515_s23 + $0x8a0] sm:$0xff] %v411_v20  ;;  %v475_v20 = vld [vmem:[%s1506_s22 + $0xaa0] sm:$0xff] }
 0x13e   : > { %924 = vst [vmem:[%s1515_s23 + $0x8a8] sm:$0xff] %v412_v21  ;;  %v476_v21 = vld [vmem:[%s1506_s22 + $0xaa8] sm:$0xff] }
 0x13f   : > { %925 = vst [vmem:[%s1515_s23 + $0x8b0] sm:$0xff] %v413_v22  ;;  %v477_v22 = vld [vmem:[%s1506_s22 + $0xab0] sm:$0xff] }
 0x140   : > { %926 = vst [vmem:[%s1515_s23 + $0x8b8] sm:$0xff] %v414_v23  ;;  %v478_v23 = vld [vmem:[%s1506_s22 + $0xab8] sm:$0xff] }
 0x141   : > { %927 = vst [vmem:[%s1515_s23 + $0x8c0] sm:$0xff] %v415_v24  ;;  %v479_v24 = vld [vmem:[%s1506_s22 + $0xac0] sm:$0xff] }
 0x142   : > { %928 = vst [vmem:[%s1515_s23 + $0x8c8] sm:$0xff] %v416_v25  ;;  %v480_v25 = vld [vmem:[%s1506_s22 + $0xac8] sm:$0xff] }
 0x143   : > { %929 = vst [vmem:[%s1515_s23 + $0x8d0] sm:$0xff] %v417_v26  ;;  %v481_v26 = vld [vmem:[%s1506_s22 + $0xad0] sm:$0xff] }
 0x144   : > { %930 = vst [vmem:[%s1515_s23 + $0x8d8] sm:$0xff] %v418_v27  ;;  %v482_v27 = vld [vmem:[%s1506_s22 + $0xad8] sm:$0xff] }
 0x145   : > { %931 = vst [vmem:[%s1515_s23 + $0x8e0] sm:$0xff] %v419_v28  ;;  %v483_v28 = vld [vmem:[%s1506_s22 + $0xae0] sm:$0xff] }
 0x146   : > { %932 = vst [vmem:[%s1515_s23 + $0x8e8] sm:$0xff] %v420_v29  ;;  %v484_v29 = vld [vmem:[%s1506_s22 + $0xae8] sm:$0xff] }
 0x147   : > { %933 = vst [vmem:[%s1515_s23 + $0x8f0] sm:$0xff] %v421_v30  ;;  %v485_v30 = vld [vmem:[%s1506_s22 + $0xaf0] sm:$0xff] }
 0x148   : > { %934 = vst [vmem:[%s1515_s23 + $0x8f8] sm:$0xff] %v422_v31  ;;  %v486_v31 = vld [vmem:[%s1506_s22 + $0xaf8] sm:$0xff] }
 0x149   : > { %935 = vst [vmem:[%s1515_s23 + $0x900] sm:$0xff] %v423_v32  ;;  %v487_v32 = vld [vmem:[%s1506_s22 + $0xb00] sm:$0xff] }
 0x14a   : > { %936 = vst [vmem:[%s1515_s23 + $0x908] sm:$0xff] %v424_v33  ;;  %v488_v33 = vld [vmem:[%s1506_s22 + $0xb08] sm:$0xff] }
 0x14b   : > { %937 = vst [vmem:[%s1515_s23 + $0x910] sm:$0xff] %v425_v34  ;;  %v489_v34 = vld [vmem:[%s1506_s22 + $0xb10] sm:$0xff] }
 0x14c   : > { %938 = vst [vmem:[%s1515_s23 + $0x918] sm:$0xff] %v426_v35  ;;  %v490_v35 = vld [vmem:[%s1506_s22 + $0xb18] sm:$0xff] }
 0x14d   : > { %939 = vst [vmem:[%s1515_s23 + $0x920] sm:$0xff] %v427_v36  ;;  %v491_v36 = vld [vmem:[%s1506_s22 + $0xb20] sm:$0xff] }
 0x14e   : > { %940 = vst [vmem:[%s1515_s23 + $0x928] sm:$0xff] %v428_v37  ;;  %v492_v37 = vld [vmem:[%s1506_s22 + $0xb28] sm:$0xff] }
 0x14f   : > { %941 = vst [vmem:[%s1515_s23 + $0x930] sm:$0xff] %v429_v38  ;;  %v493_v38 = vld [vmem:[%s1506_s22 + $0xb30] sm:$0xff] }
 0x150   : > { %942 = vst [vmem:[%s1515_s23 + $0x938] sm:$0xff] %v430_v39  ;;  %v494_v39 = vld [vmem:[%s1506_s22 + $0xb38] sm:$0xff] }
 0x151   : > { %943 = vst [vmem:[%s1515_s23 + $0x940] sm:$0xff] %v431_v40  ;;  %v495_v40 = vld [vmem:[%s1506_s22 + $0xb40] sm:$0xff] }
 0x152   : > { %944 = vst [vmem:[%s1515_s23 + $0x948] sm:$0xff] %v432_v41  ;;  %v496_v41 = vld [vmem:[%s1506_s22 + $0xb48] sm:$0xff] }
 0x153   : > { %945 = vst [vmem:[%s1515_s23 + $0x950] sm:$0xff] %v433_v42  ;;  %v497_v42 = vld [vmem:[%s1506_s22 + $0xb50] sm:$0xff] }
 0x154   : > { %946 = vst [vmem:[%s1515_s23 + $0x958] sm:$0xff] %v434_v43  ;;  %v498_v43 = vld [vmem:[%s1506_s22 + $0xb58] sm:$0xff] }
 0x155   : > { %947 = vst [vmem:[%s1515_s23 + $0x960] sm:$0xff] %v435_v44  ;;  %v499_v44 = vld [vmem:[%s1506_s22 + $0xb60] sm:$0xff] }
 0x156   : > { %948 = vst [vmem:[%s1515_s23 + $0x968] sm:$0xff] %v436_v45  ;;  %v500_v45 = vld [vmem:[%s1506_s22 + $0xb68] sm:$0xff] }
 0x157   : > { %949 = vst [vmem:[%s1515_s23 + $0x970] sm:$0xff] %v437_v46  ;;  %v501_v46 = vld [vmem:[%s1506_s22 + $0xb70] sm:$0xff] }
 0x158   : > { %950 = vst [vmem:[%s1515_s23 + $0x978] sm:$0xff] %v438_v47  ;;  %v502_v47 = vld [vmem:[%s1506_s22 + $0xb78] sm:$0xff] }
 0x159   : > { %951 = vst [vmem:[%s1515_s23 + $0x980] sm:$0xff] %v439_v48  ;;  %v503_v48 = vld [vmem:[%s1506_s22 + $0xb80] sm:$0xff] }
 0x15a   : > { %952 = vst [vmem:[%s1515_s23 + $0x988] sm:$0xff] %v440_v49  ;;  %v504_v49 = vld [vmem:[%s1506_s22 + $0xb88] sm:$0xff] }
 0x15b   : > { %953 = vst [vmem:[%s1515_s23 + $0x990] sm:$0xff] %v441_v50  ;;  %v505_v50 = vld [vmem:[%s1506_s22 + $0xb90] sm:$0xff] }
 0x15c   : > { %954 = vst [vmem:[%s1515_s23 + $0x998] sm:$0xff] %v442_v51  ;;  %v506_v51 = vld [vmem:[%s1506_s22 + $0xb98] sm:$0xff] }
 0x15d   : > { %955 = vst [vmem:[%s1515_s23 + $0x9a0] sm:$0xff] %v443_v52  ;;  %v507_v52 = vld [vmem:[%s1506_s22 + $0xba0] sm:$0xff] }
 0x15e   : > { %956 = vst [vmem:[%s1515_s23 + $0x9a8] sm:$0xff] %v444_v53  ;;  %v508_v53 = vld [vmem:[%s1506_s22 + $0xba8] sm:$0xff] }
 0x15f   : > { %957 = vst [vmem:[%s1515_s23 + $0x9b0] sm:$0xff] %v445_v54  ;;  %v509_v54 = vld [vmem:[%s1506_s22 + $0xbb0] sm:$0xff] }
 0x160   : > { %958 = vst [vmem:[%s1515_s23 + $0x9b8] sm:$0xff] %v446_v55  ;;  %v510_v55 = vld [vmem:[%s1506_s22 + $0xbb8] sm:$0xff] }
 0x161   : > { %959 = vst [vmem:[%s1515_s23 + $0x9c0] sm:$0xff] %v447_v56  ;;  %v511_v56 = vld [vmem:[%s1506_s22 + $0xbc0] sm:$0xff] }
 0x162   : > { %960 = vst [vmem:[%s1515_s23 + $0x9c8] sm:$0xff] %v448_v57  ;;  %v512_v57 = vld [vmem:[%s1506_s22 + $0xbc8] sm:$0xff] }
 0x163   : > { %961 = vst [vmem:[%s1515_s23 + $0x9d0] sm:$0xff] %v449_v58  ;;  %v513_v58 = vld [vmem:[%s1506_s22 + $0xbd0] sm:$0xff] }
 0x164   : > { %962 = vst [vmem:[%s1515_s23 + $0x9d8] sm:$0xff] %v450_v59  ;;  %v514_v59 = vld [vmem:[%s1506_s22 + $0xbd8] sm:$0xff] }
 0x165   : > { %963 = vst [vmem:[%s1515_s23 + $0x9e0] sm:$0xff] %v451_v60  ;;  %v515_v60 = vld [vmem:[%s1506_s22 + $0xbe0] sm:$0xff] }
 0x166   : > { %964 = vst [vmem:[%s1515_s23 + $0x9e8] sm:$0xff] %v452_v61  ;;  %v516_v61 = vld [vmem:[%s1506_s22 + $0xbe8] sm:$0xff] }
 0x167   : > { %965 = vst [vmem:[%s1515_s23 + $0x9f0] sm:$0xff] %v453_v62  ;;  %v517_v62 = vld [vmem:[%s1506_s22 + $0xbf0] sm:$0xff] }
 0x168   : > { %966 = vst [vmem:[%s1515_s23 + $0x9f8] sm:$0xff] %v454_v63  ;;  %v518_v63 = vld [vmem:[%s1506_s22 + $0xbf8] sm:$0xff] }
 0x169   : > { %967 = vst [vmem:[%s1515_s23 + $0xa00] sm:$0xff] %v455_v0  ;;  %v519_v0 = vld [vmem:[%s1506_s22 + $0xc00] sm:$0xff] }
 0x16a   : > { %968 = vst [vmem:[%s1515_s23 + $0xa08] sm:$0xff] %v456_v1  ;;  %v520_v1 = vld [vmem:[%s1506_s22 + $0xc08] sm:$0xff] }
 0x16b   : > { %969 = vst [vmem:[%s1515_s23 + $0xa10] sm:$0xff] %v457_v2  ;;  %v521_v2 = vld [vmem:[%s1506_s22 + $0xc10] sm:$0xff] }
 0x16c   : > { %970 = vst [vmem:[%s1515_s23 + $0xa18] sm:$0xff] %v458_v3  ;;  %v522_v3 = vld [vmem:[%s1506_s22 + $0xc18] sm:$0xff] }
 0x16d   : > { %971 = vst [vmem:[%s1515_s23 + $0xa20] sm:$0xff] %v459_v4  ;;  %v523_v4 = vld [vmem:[%s1506_s22 + $0xc20] sm:$0xff] }
 0x16e   : > { %972 = vst [vmem:[%s1515_s23 + $0xa28] sm:$0xff] %v460_v5  ;;  %v524_v5 = vld [vmem:[%s1506_s22 + $0xc28] sm:$0xff] }
 0x16f   : > { %973 = vst [vmem:[%s1515_s23 + $0xa30] sm:$0xff] %v461_v6  ;;  %v525_v6 = vld [vmem:[%s1506_s22 + $0xc30] sm:$0xff] }
 0x170   : > { %974 = vst [vmem:[%s1515_s23 + $0xa38] sm:$0xff] %v462_v7  ;;  %v526_v7 = vld [vmem:[%s1506_s22 + $0xc38] sm:$0xff] }
 0x171   : > { %975 = vst [vmem:[%s1515_s23 + $0xa40] sm:$0xff] %v463_v8  ;;  %v527_v8 = vld [vmem:[%s1506_s22 + $0xc40] sm:$0xff] }
 0x172   : > { %976 = vst [vmem:[%s1515_s23 + $0xa48] sm:$0xff] %v464_v9  ;;  %v528_v9 = vld [vmem:[%s1506_s22 + $0xc48] sm:$0xff] }
 0x173   : > { %977 = vst [vmem:[%s1515_s23 + $0xa50] sm:$0xff] %v465_v10  ;;  %v529_v10 = vld [vmem:[%s1506_s22 + $0xc50] sm:$0xff] }
 0x174   : > { %978 = vst [vmem:[%s1515_s23 + $0xa58] sm:$0xff] %v466_v11  ;;  %v530_v11 = vld [vmem:[%s1506_s22 + $0xc58] sm:$0xff] }
 0x175   : > { %979 = vst [vmem:[%s1515_s23 + $0xa60] sm:$0xff] %v467_v12  ;;  %v531_v12 = vld [vmem:[%s1506_s22 + $0xc60] sm:$0xff] }
 0x176   : > { %980 = vst [vmem:[%s1515_s23 + $0xa68] sm:$0xff] %v468_v13  ;;  %v532_v13 = vld [vmem:[%s1506_s22 + $0xc68] sm:$0xff] }
 0x177   : > { %981 = vst [vmem:[%s1515_s23 + $0xa70] sm:$0xff] %v469_v14  ;;  %v533_v14 = vld [vmem:[%s1506_s22 + $0xc70] sm:$0xff] }
 0x178   : > { %982 = vst [vmem:[%s1515_s23 + $0xa78] sm:$0xff] %v470_v15  ;;  %v534_v15 = vld [vmem:[%s1506_s22 + $0xc78] sm:$0xff] }
 0x179   : > { %983 = vst [vmem:[%s1515_s23 + $0xa80] sm:$0xff] %v471_v16  ;;  %v535_v16 = vld [vmem:[%s1506_s22 + $0xc80] sm:$0xff] }
 0x17a   : > { %984 = vst [vmem:[%s1515_s23 + $0xa88] sm:$0xff] %v472_v17  ;;  %v536_v17 = vld [vmem:[%s1506_s22 + $0xc88] sm:$0xff] }
 0x17b   : > { %985 = vst [vmem:[%s1515_s23 + $0xa90] sm:$0xff] %v473_v18  ;;  %v537_v18 = vld [vmem:[%s1506_s22 + $0xc90] sm:$0xff] }
 0x17c   : > { %986 = vst [vmem:[%s1515_s23 + $0xa98] sm:$0xff] %v474_v19  ;;  %v538_v19 = vld [vmem:[%s1506_s22 + $0xc98] sm:$0xff] }
 0x17d   : > { %987 = vst [vmem:[%s1515_s23 + $0xaa0] sm:$0xff] %v475_v20  ;;  %v539_v20 = vld [vmem:[%s1506_s22 + $0xca0] sm:$0xff] }
 0x17e   : > { %988 = vst [vmem:[%s1515_s23 + $0xaa8] sm:$0xff] %v476_v21  ;;  %v540_v21 = vld [vmem:[%s1506_s22 + $0xca8] sm:$0xff] }
 0x17f   : > { %989 = vst [vmem:[%s1515_s23 + $0xab0] sm:$0xff] %v477_v22  ;;  %v541_v22 = vld [vmem:[%s1506_s22 + $0xcb0] sm:$0xff] }
 0x180   : > { %990 = vst [vmem:[%s1515_s23 + $0xab8] sm:$0xff] %v478_v23  ;;  %v542_v23 = vld [vmem:[%s1506_s22 + $0xcb8] sm:$0xff] }
 0x181   : > { %991 = vst [vmem:[%s1515_s23 + $0xac0] sm:$0xff] %v479_v24  ;;  %v543_v24 = vld [vmem:[%s1506_s22 + $0xcc0] sm:$0xff] }
 0x182   : > { %992 = vst [vmem:[%s1515_s23 + $0xac8] sm:$0xff] %v480_v25  ;;  %v544_v25 = vld [vmem:[%s1506_s22 + $0xcc8] sm:$0xff] }
 0x183   : > { %993 = vst [vmem:[%s1515_s23 + $0xad0] sm:$0xff] %v481_v26  ;;  %v545_v26 = vld [vmem:[%s1506_s22 + $0xcd0] sm:$0xff] }
 0x184   : > { %994 = vst [vmem:[%s1515_s23 + $0xad8] sm:$0xff] %v482_v27  ;;  %v546_v27 = vld [vmem:[%s1506_s22 + $0xcd8] sm:$0xff] }
 0x185   : > { %995 = vst [vmem:[%s1515_s23 + $0xae0] sm:$0xff] %v483_v28  ;;  %v547_v28 = vld [vmem:[%s1506_s22 + $0xce0] sm:$0xff] }
 0x186   : > { %996 = vst [vmem:[%s1515_s23 + $0xae8] sm:$0xff] %v484_v29  ;;  %v548_v29 = vld [vmem:[%s1506_s22 + $0xce8] sm:$0xff] }
 0x187   : > { %997 = vst [vmem:[%s1515_s23 + $0xaf0] sm:$0xff] %v485_v30  ;;  %v549_v30 = vld [vmem:[%s1506_s22 + $0xcf0] sm:$0xff] }
 0x188   : > { %998 = vst [vmem:[%s1515_s23 + $0xaf8] sm:$0xff] %v486_v31  ;;  %v550_v31 = vld [vmem:[%s1506_s22 + $0xcf8] sm:$0xff] }
 0x189   : > { %999 = vst [vmem:[%s1515_s23 + $0xb00] sm:$0xff] %v487_v32  ;;  %v551_v32 = vld [vmem:[%s1506_s22 + $0xd00] sm:$0xff] }
 0x18a   : > { %1000 = vst [vmem:[%s1515_s23 + $0xb08] sm:$0xff] %v488_v33  ;;  %v552_v33 = vld [vmem:[%s1506_s22 + $0xd08] sm:$0xff] }
 0x18b   : > { %1001 = vst [vmem:[%s1515_s23 + $0xb10] sm:$0xff] %v489_v34  ;;  %v553_v34 = vld [vmem:[%s1506_s22 + $0xd10] sm:$0xff] }
 0x18c   : > { %1002 = vst [vmem:[%s1515_s23 + $0xb18] sm:$0xff] %v490_v35  ;;  %v554_v35 = vld [vmem:[%s1506_s22 + $0xd18] sm:$0xff] }
 0x18d   : > { %1003 = vst [vmem:[%s1515_s23 + $0xb20] sm:$0xff] %v491_v36  ;;  %v555_v36 = vld [vmem:[%s1506_s22 + $0xd20] sm:$0xff] }
 0x18e   : > { %1004 = vst [vmem:[%s1515_s23 + $0xb28] sm:$0xff] %v492_v37  ;;  %v556_v37 = vld [vmem:[%s1506_s22 + $0xd28] sm:$0xff] }
 0x18f   : > { %1005 = vst [vmem:[%s1515_s23 + $0xb30] sm:$0xff] %v493_v38  ;;  %v557_v38 = vld [vmem:[%s1506_s22 + $0xd30] sm:$0xff] }
 0x190   : > { %1006 = vst [vmem:[%s1515_s23 + $0xb38] sm:$0xff] %v494_v39  ;;  %v558_v39 = vld [vmem:[%s1506_s22 + $0xd38] sm:$0xff] }
 0x191   : > { %1007 = vst [vmem:[%s1515_s23 + $0xb40] sm:$0xff] %v495_v40  ;;  %v559_v40 = vld [vmem:[%s1506_s22 + $0xd40] sm:$0xff] }
 0x192   : > { %1008 = vst [vmem:[%s1515_s23 + $0xb48] sm:$0xff] %v496_v41  ;;  %v560_v41 = vld [vmem:[%s1506_s22 + $0xd48] sm:$0xff] }
 0x193   : > { %1009 = vst [vmem:[%s1515_s23 + $0xb50] sm:$0xff] %v497_v42  ;;  %v561_v42 = vld [vmem:[%s1506_s22 + $0xd50] sm:$0xff] }
 0x194   : > { %1010 = vst [vmem:[%s1515_s23 + $0xb58] sm:$0xff] %v498_v43  ;;  %v562_v43 = vld [vmem:[%s1506_s22 + $0xd58] sm:$0xff] }
 0x195   : > { %1011 = vst [vmem:[%s1515_s23 + $0xb60] sm:$0xff] %v499_v44  ;;  %v563_v44 = vld [vmem:[%s1506_s22 + $0xd60] sm:$0xff] }
 0x196   : > { %1012 = vst [vmem:[%s1515_s23 + $0xb68] sm:$0xff] %v500_v45  ;;  %v564_v45 = vld [vmem:[%s1506_s22 + $0xd68] sm:$0xff] }
 0x197   : > { %1013 = vst [vmem:[%s1515_s23 + $0xb70] sm:$0xff] %v501_v46  ;;  %v565_v46 = vld [vmem:[%s1506_s22 + $0xd70] sm:$0xff] }
 0x198   : > { %1014 = vst [vmem:[%s1515_s23 + $0xb78] sm:$0xff] %v502_v47  ;;  %v566_v47 = vld [vmem:[%s1506_s22 + $0xd78] sm:$0xff] }
 0x199   : > { %1015 = vst [vmem:[%s1515_s23 + $0xb80] sm:$0xff] %v503_v48  ;;  %v567_v48 = vld [vmem:[%s1506_s22 + $0xd80] sm:$0xff] }
 0x19a   : > { %1016 = vst [vmem:[%s1515_s23 + $0xb88] sm:$0xff] %v504_v49  ;;  %v568_v49 = vld [vmem:[%s1506_s22 + $0xd88] sm:$0xff] }
 0x19b   : > { %1017 = vst [vmem:[%s1515_s23 + $0xb90] sm:$0xff] %v505_v50  ;;  %v569_v50 = vld [vmem:[%s1506_s22 + $0xd90] sm:$0xff] }
 0x19c   : > { %1018 = vst [vmem:[%s1515_s23 + $0xb98] sm:$0xff] %v506_v51  ;;  %v570_v51 = vld [vmem:[%s1506_s22 + $0xd98] sm:$0xff] }
 0x19d   : > { %1019 = vst [vmem:[%s1515_s23 + $0xba0] sm:$0xff] %v507_v52  ;;  %v571_v52 = vld [vmem:[%s1506_s22 + $0xda0] sm:$0xff] }
 0x19e   : > { %1020 = vst [vmem:[%s1515_s23 + $0xba8] sm:$0xff] %v508_v53  ;;  %v572_v53 = vld [vmem:[%s1506_s22 + $0xda8] sm:$0xff] }
 0x19f   : > { %1021 = vst [vmem:[%s1515_s23 + $0xbb0] sm:$0xff] %v509_v54  ;;  %v573_v54 = vld [vmem:[%s1506_s22 + $0xdb0] sm:$0xff] }
 0x1a0   : > { %1022 = vst [vmem:[%s1515_s23 + $0xbb8] sm:$0xff] %v510_v55  ;;  %v574_v55 = vld [vmem:[%s1506_s22 + $0xdb8] sm:$0xff] }
 0x1a1   : > { %1023 = vst [vmem:[%s1515_s23 + $0xbc0] sm:$0xff] %v511_v56  ;;  %v575_v56 = vld [vmem:[%s1506_s22 + $0xdc0] sm:$0xff] }
 0x1a2   : > { %1024 = vst [vmem:[%s1515_s23 + $0xbc8] sm:$0xff] %v512_v57  ;;  %v576_v57 = vld [vmem:[%s1506_s22 + $0xdc8] sm:$0xff] }
 0x1a3   : > { %1025 = vst [vmem:[%s1515_s23 + $0xbd0] sm:$0xff] %v513_v58  ;;  %v577_v58 = vld [vmem:[%s1506_s22 + $0xdd0] sm:$0xff] }
 0x1a4   : > { %1026 = vst [vmem:[%s1515_s23 + $0xbd8] sm:$0xff] %v514_v59  ;;  %v578_v59 = vld [vmem:[%s1506_s22 + $0xdd8] sm:$0xff] }
 0x1a5   : > { %1027 = vst [vmem:[%s1515_s23 + $0xbe0] sm:$0xff] %v515_v60  ;;  %v579_v60 = vld [vmem:[%s1506_s22 + $0xde0] sm:$0xff] }
 0x1a6   : > { %1028 = vst [vmem:[%s1515_s23 + $0xbe8] sm:$0xff] %v516_v61  ;;  %v580_v61 = vld [vmem:[%s1506_s22 + $0xde8] sm:$0xff] }
 0x1a7   : > { %1029 = vst [vmem:[%s1515_s23 + $0xbf0] sm:$0xff] %v517_v62  ;;  %v581_v62 = vld [vmem:[%s1506_s22 + $0xdf0] sm:$0xff] }
 0x1a8   : > { %1030 = vst [vmem:[%s1515_s23 + $0xbf8] sm:$0xff] %v518_v63  ;;  %v582_v63 = vld [vmem:[%s1506_s22 + $0xdf8] sm:$0xff] }
 0x1a9   : > { %1031 = vst [vmem:[%s1515_s23 + $0xc00] sm:$0xff] %v519_v0  ;;  %v583_v0 = vld [vmem:[%s1506_s22 + $0xe00] sm:$0xff] }
 0x1aa   : > { %1032 = vst [vmem:[%s1515_s23 + $0xc08] sm:$0xff] %v520_v1  ;;  %v584_v1 = vld [vmem:[%s1506_s22 + $0xe08] sm:$0xff] }
 0x1ab   : > { %1033 = vst [vmem:[%s1515_s23 + $0xc10] sm:$0xff] %v521_v2  ;;  %v585_v2 = vld [vmem:[%s1506_s22 + $0xe10] sm:$0xff] }
 0x1ac   : > { %1034 = vst [vmem:[%s1515_s23 + $0xc18] sm:$0xff] %v522_v3  ;;  %v586_v3 = vld [vmem:[%s1506_s22 + $0xe18] sm:$0xff] }
 0x1ad   : > { %1035 = vst [vmem:[%s1515_s23 + $0xc20] sm:$0xff] %v523_v4  ;;  %v587_v4 = vld [vmem:[%s1506_s22 + $0xe20] sm:$0xff] }
 0x1ae   : > { %1036 = vst [vmem:[%s1515_s23 + $0xc28] sm:$0xff] %v524_v5  ;;  %v588_v5 = vld [vmem:[%s1506_s22 + $0xe28] sm:$0xff] }
 0x1af   : > { %1037 = vst [vmem:[%s1515_s23 + $0xc30] sm:$0xff] %v525_v6  ;;  %v589_v6 = vld [vmem:[%s1506_s22 + $0xe30] sm:$0xff] }
 0x1b0   : > { %1038 = vst [vmem:[%s1515_s23 + $0xc38] sm:$0xff] %v526_v7  ;;  %v590_v7 = vld [vmem:[%s1506_s22 + $0xe38] sm:$0xff] }
 0x1b1   : > { %1039 = vst [vmem:[%s1515_s23 + $0xc40] sm:$0xff] %v527_v8  ;;  %v591_v8 = vld [vmem:[%s1506_s22 + $0xe40] sm:$0xff] }
 0x1b2   : > { %1040 = vst [vmem:[%s1515_s23 + $0xc48] sm:$0xff] %v528_v9  ;;  %v592_v9 = vld [vmem:[%s1506_s22 + $0xe48] sm:$0xff] }
 0x1b3   : > { %1041 = vst [vmem:[%s1515_s23 + $0xc50] sm:$0xff] %v529_v10  ;;  %v593_v10 = vld [vmem:[%s1506_s22 + $0xe50] sm:$0xff] }
 0x1b4   : > { %1042 = vst [vmem:[%s1515_s23 + $0xc58] sm:$0xff] %v530_v11  ;;  %v594_v11 = vld [vmem:[%s1506_s22 + $0xe58] sm:$0xff] }
 0x1b5   : > { %1043 = vst [vmem:[%s1515_s23 + $0xc60] sm:$0xff] %v531_v12  ;;  %v595_v12 = vld [vmem:[%s1506_s22 + $0xe60] sm:$0xff] }
 0x1b6   : > { %1044 = vst [vmem:[%s1515_s23 + $0xc68] sm:$0xff] %v532_v13  ;;  %v596_v13 = vld [vmem:[%s1506_s22 + $0xe68] sm:$0xff] }
 0x1b7   : > { %1045 = vst [vmem:[%s1515_s23 + $0xc70] sm:$0xff] %v533_v14  ;;  %v597_v14 = vld [vmem:[%s1506_s22 + $0xe70] sm:$0xff] }
 0x1b8   : > { %1046 = vst [vmem:[%s1515_s23 + $0xc78] sm:$0xff] %v534_v15  ;;  %v598_v15 = vld [vmem:[%s1506_s22 + $0xe78] sm:$0xff] }
 0x1b9   : > { %1047 = vst [vmem:[%s1515_s23 + $0xc80] sm:$0xff] %v535_v16  ;;  %v599_v16 = vld [vmem:[%s1506_s22 + $0xe80] sm:$0xff] }
 0x1ba   : > { %1048 = vst [vmem:[%s1515_s23 + $0xc88] sm:$0xff] %v536_v17  ;;  %v600_v17 = vld [vmem:[%s1506_s22 + $0xe88] sm:$0xff] }
 0x1bb   : > { %1049 = vst [vmem:[%s1515_s23 + $0xc90] sm:$0xff] %v537_v18  ;;  %v601_v18 = vld [vmem:[%s1506_s22 + $0xe90] sm:$0xff] }
 0x1bc   : > { %1050 = vst [vmem:[%s1515_s23 + $0xc98] sm:$0xff] %v538_v19  ;;  %v602_v19 = vld [vmem:[%s1506_s22 + $0xe98] sm:$0xff] }
 0x1bd   : > { %1051 = vst [vmem:[%s1515_s23 + $0xca0] sm:$0xff] %v539_v20  ;;  %v603_v20 = vld [vmem:[%s1506_s22 + $0xea0] sm:$0xff] }
 0x1be   : > { %1052 = vst [vmem:[%s1515_s23 + $0xca8] sm:$0xff] %v540_v21  ;;  %v604_v21 = vld [vmem:[%s1506_s22 + $0xea8] sm:$0xff] }
 0x1bf   : > { %1053 = vst [vmem:[%s1515_s23 + $0xcb0] sm:$0xff] %v541_v22  ;;  %v605_v22 = vld [vmem:[%s1506_s22 + $0xeb0] sm:$0xff] }
 0x1c0   : > { %1054 = vst [vmem:[%s1515_s23 + $0xcb8] sm:$0xff] %v542_v23  ;;  %v606_v23 = vld [vmem:[%s1506_s22 + $0xeb8] sm:$0xff] }
 0x1c1   : > { %1055 = vst [vmem:[%s1515_s23 + $0xcc0] sm:$0xff] %v543_v24  ;;  %v607_v24 = vld [vmem:[%s1506_s22 + $0xec0] sm:$0xff] }
 0x1c2   : > { %1056 = vst [vmem:[%s1515_s23 + $0xcc8] sm:$0xff] %v544_v25  ;;  %v608_v25 = vld [vmem:[%s1506_s22 + $0xec8] sm:$0xff] }
 0x1c3   : > { %1057 = vst [vmem:[%s1515_s23 + $0xcd0] sm:$0xff] %v545_v26  ;;  %v609_v26 = vld [vmem:[%s1506_s22 + $0xed0] sm:$0xff] }
 0x1c4   : > { %1058 = vst [vmem:[%s1515_s23 + $0xcd8] sm:$0xff] %v546_v27  ;;  %v610_v27 = vld [vmem:[%s1506_s22 + $0xed8] sm:$0xff] }
 0x1c5   : > { %1059 = vst [vmem:[%s1515_s23 + $0xce0] sm:$0xff] %v547_v28  ;;  %v611_v28 = vld [vmem:[%s1506_s22 + $0xee0] sm:$0xff] }
 0x1c6   : > { %1060 = vst [vmem:[%s1515_s23 + $0xce8] sm:$0xff] %v548_v29  ;;  %v612_v29 = vld [vmem:[%s1506_s22 + $0xee8] sm:$0xff] }
 0x1c7   : > { %1061 = vst [vmem:[%s1515_s23 + $0xcf0] sm:$0xff] %v549_v30  ;;  %v613_v30 = vld [vmem:[%s1506_s22 + $0xef0] sm:$0xff] }
 0x1c8   : > { %1062 = vst [vmem:[%s1515_s23 + $0xcf8] sm:$0xff] %v550_v31  ;;  %v614_v31 = vld [vmem:[%s1506_s22 + $0xef8] sm:$0xff] }
 0x1c9   : > { %1063 = vst [vmem:[%s1515_s23 + $0xd00] sm:$0xff] %v551_v32  ;;  %v615_v32 = vld [vmem:[%s1506_s22 + $0xf00] sm:$0xff] }
 0x1ca   : > { %1064 = vst [vmem:[%s1515_s23 + $0xd08] sm:$0xff] %v552_v33  ;;  %v616_v33 = vld [vmem:[%s1506_s22 + $0xf08] sm:$0xff] }
 0x1cb   : > { %1065 = vst [vmem:[%s1515_s23 + $0xd10] sm:$0xff] %v553_v34  ;;  %v617_v34 = vld [vmem:[%s1506_s22 + $0xf10] sm:$0xff] }
 0x1cc   : > { %1066 = vst [vmem:[%s1515_s23 + $0xd18] sm:$0xff] %v554_v35  ;;  %v618_v35 = vld [vmem:[%s1506_s22 + $0xf18] sm:$0xff] }
 0x1cd   : > { %1067 = vst [vmem:[%s1515_s23 + $0xd20] sm:$0xff] %v555_v36  ;;  %v619_v36 = vld [vmem:[%s1506_s22 + $0xf20] sm:$0xff] }
 0x1ce   : > { %1068 = vst [vmem:[%s1515_s23 + $0xd28] sm:$0xff] %v556_v37  ;;  %v620_v37 = vld [vmem:[%s1506_s22 + $0xf28] sm:$0xff] }
 0x1cf   : > { %1069 = vst [vmem:[%s1515_s23 + $0xd30] sm:$0xff] %v557_v38  ;;  %v621_v38 = vld [vmem:[%s1506_s22 + $0xf30] sm:$0xff] }
 0x1d0   : > { %1070 = vst [vmem:[%s1515_s23 + $0xd38] sm:$0xff] %v558_v39  ;;  %v622_v39 = vld [vmem:[%s1506_s22 + $0xf38] sm:$0xff] }
 0x1d1   : > { %1071 = vst [vmem:[%s1515_s23 + $0xd40] sm:$0xff] %v559_v40  ;;  %v623_v40 = vld [vmem:[%s1506_s22 + $0xf40] sm:$0xff] }
 0x1d2   : > { %1072 = vst [vmem:[%s1515_s23 + $0xd48] sm:$0xff] %v560_v41  ;;  %v624_v41 = vld [vmem:[%s1506_s22 + $0xf48] sm:$0xff] }
 0x1d3   : > { %1073 = vst [vmem:[%s1515_s23 + $0xd50] sm:$0xff] %v561_v42  ;;  %v625_v42 = vld [vmem:[%s1506_s22 + $0xf50] sm:$0xff] }
 0x1d4   : > { %1074 = vst [vmem:[%s1515_s23 + $0xd58] sm:$0xff] %v562_v43  ;;  %v626_v43 = vld [vmem:[%s1506_s22 + $0xf58] sm:$0xff] }
 0x1d5   : > { %1075 = vst [vmem:[%s1515_s23 + $0xd60] sm:$0xff] %v563_v44  ;;  %v627_v44 = vld [vmem:[%s1506_s22 + $0xf60] sm:$0xff] }
 0x1d6   : > { %1076 = vst [vmem:[%s1515_s23 + $0xd68] sm:$0xff] %v564_v45  ;;  %v628_v45 = vld [vmem:[%s1506_s22 + $0xf68] sm:$0xff] }
 0x1d7   : > { %1077 = vst [vmem:[%s1515_s23 + $0xd70] sm:$0xff] %v565_v46  ;;  %v629_v46 = vld [vmem:[%s1506_s22 + $0xf70] sm:$0xff] }
 0x1d8   : > { %1078 = vst [vmem:[%s1515_s23 + $0xd78] sm:$0xff] %v566_v47  ;;  %v630_v47 = vld [vmem:[%s1506_s22 + $0xf78] sm:$0xff] }
 0x1d9   : > { %1079 = vst [vmem:[%s1515_s23 + $0xd80] sm:$0xff] %v567_v48  ;;  %v631_v48 = vld [vmem:[%s1506_s22 + $0xf80] sm:$0xff] }
 0x1da   : > { %1080 = vst [vmem:[%s1515_s23 + $0xd88] sm:$0xff] %v568_v49  ;;  %v632_v49 = vld [vmem:[%s1506_s22 + $0xf88] sm:$0xff] }
 0x1db   : > { %1081 = vst [vmem:[%s1515_s23 + $0xd90] sm:$0xff] %v569_v50  ;;  %v633_v50 = vld [vmem:[%s1506_s22 + $0xf90] sm:$0xff] }
 0x1dc   : > { %1082 = vst [vmem:[%s1515_s23 + $0xd98] sm:$0xff] %v570_v51  ;;  %v634_v51 = vld [vmem:[%s1506_s22 + $0xf98] sm:$0xff] }
 0x1dd   : > { %1083 = vst [vmem:[%s1515_s23 + $0xda0] sm:$0xff] %v571_v52  ;;  %v635_v52 = vld [vmem:[%s1506_s22 + $0xfa0] sm:$0xff] }
 0x1de   : > { %1084 = vst [vmem:[%s1515_s23 + $0xda8] sm:$0xff] %v572_v53  ;;  %v636_v53 = vld [vmem:[%s1506_s22 + $0xfa8] sm:$0xff] }
 0x1df   : > { %1085 = vst [vmem:[%s1515_s23 + $0xdb0] sm:$0xff] %v573_v54  ;;  %v637_v54 = vld [vmem:[%s1506_s22 + $0xfb0] sm:$0xff] }
 0x1e0   : > { %1086 = vst [vmem:[%s1515_s23 + $0xdb8] sm:$0xff] %v574_v55  ;;  %v638_v55 = vld [vmem:[%s1506_s22 + $0xfb8] sm:$0xff] }
 0x1e1   : > { %1087 = vst [vmem:[%s1515_s23 + $0xdc0] sm:$0xff] %v575_v56  ;;  %v639_v56 = vld [vmem:[%s1506_s22 + $0xfc0] sm:$0xff] }
 0x1e2   : > { %1088 = vst [vmem:[%s1515_s23 + $0xdc8] sm:$0xff] %v576_v57  ;;  %v640_v57 = vld [vmem:[%s1506_s22 + $0xfc8] sm:$0xff] }
 0x1e3   : > { %1089 = vst [vmem:[%s1515_s23 + $0xdd0] sm:$0xff] %v577_v58  ;;  %v641_v58 = vld [vmem:[%s1506_s22 + $0xfd0] sm:$0xff] }
 0x1e4   : > { %1090 = vst [vmem:[%s1515_s23 + $0xdd8] sm:$0xff] %v578_v59  ;;  %v642_v59 = vld [vmem:[%s1506_s22 + $0xfd8] sm:$0xff] }
 0x1e5   : > { %1091 = vst [vmem:[%s1515_s23 + $0xde0] sm:$0xff] %v579_v60  ;;  %v643_v60 = vld [vmem:[%s1506_s22 + $0xfe0] sm:$0xff] }
 0x1e6   : > { %1092 = vst [vmem:[%s1515_s23 + $0xde8] sm:$0xff] %v580_v61  ;;  %v644_v61 = vld [vmem:[%s1506_s22 + $0xfe8] sm:$0xff] }
 0x1e7   : > { %1093 = vst [vmem:[%s1515_s23 + $0xdf0] sm:$0xff] %v581_v62  ;;  %v645_v62 = vld [vmem:[%s1506_s22 + $0xff0] sm:$0xff] }
 0x1e8   : > { %1094 = vst [vmem:[%s1515_s23 + $0xdf8] sm:$0xff] %v582_v63  ;;  %v646_v63 = vld [vmem:[%s1506_s22 + $0xff8] sm:$0xff] }
 0x1e9   : > { %1095 = vst [vmem:[%s1515_s23 + $0xe00] sm:$0xff] %v583_v0 }
 0x1ea   : > { %1096 = vst [vmem:[%s1515_s23 + $0xe08] sm:$0xff] %v584_v1 }
 0x1eb   : > { %1097 = vst [vmem:[%s1515_s23 + $0xe10] sm:$0xff] %v585_v2 }
 0x1ec   : > { %1098 = vst [vmem:[%s1515_s23 + $0xe18] sm:$0xff] %v586_v3 }
 0x1ed   : > { %1099 = vst [vmem:[%s1515_s23 + $0xe20] sm:$0xff] %v587_v4 }
 0x1ee   : > { %1100 = vst [vmem:[%s1515_s23 + $0xe28] sm:$0xff] %v588_v5 }
 0x1ef   : > { %1101 = vst [vmem:[%s1515_s23 + $0xe30] sm:$0xff] %v589_v6 }
 0x1f0   : > { %1102 = vst [vmem:[%s1515_s23 + $0xe38] sm:$0xff] %v590_v7 }
 0x1f1   : > { %1103 = vst [vmem:[%s1515_s23 + $0xe40] sm:$0xff] %v591_v8 }
 0x1f2   : > { %1104 = vst [vmem:[%s1515_s23 + $0xe48] sm:$0xff] %v592_v9 }
 0x1f3   : > { %1105 = vst [vmem:[%s1515_s23 + $0xe50] sm:$0xff] %v593_v10 }
 0x1f4   : > { %1106 = vst [vmem:[%s1515_s23 + $0xe58] sm:$0xff] %v594_v11 }
 0x1f5   : > { %1107 = vst [vmem:[%s1515_s23 + $0xe60] sm:$0xff] %v595_v12 }
 0x1f6   : > { %1108 = vst [vmem:[%s1515_s23 + $0xe68] sm:$0xff] %v596_v13 }
 0x1f7   : > { %1109 = vst [vmem:[%s1515_s23 + $0xe70] sm:$0xff] %v597_v14 }
 0x1f8   : > { %1110 = vst [vmem:[%s1515_s23 + $0xe78] sm:$0xff] %v598_v15 }
 0x1f9   : > { %1111 = vst [vmem:[%s1515_s23 + $0xe80] sm:$0xff] %v599_v16 }
 0x1fa   : > { %1112 = vst [vmem:[%s1515_s23 + $0xe88] sm:$0xff] %v600_v17 }
 0x1fb   : > { %1113 = vst [vmem:[%s1515_s23 + $0xe90] sm:$0xff] %v601_v18 }
 0x1fc   : > { %1114 = vst [vmem:[%s1515_s23 + $0xe98] sm:$0xff] %v602_v19 }
 0x1fd   : > { %1115 = vst [vmem:[%s1515_s23 + $0xea0] sm:$0xff] %v603_v20 }
 0x1fe   : > { %1116 = vst [vmem:[%s1515_s23 + $0xea8] sm:$0xff] %v604_v21 }
 0x1ff   : > { %1117 = vst [vmem:[%s1515_s23 + $0xeb0] sm:$0xff] %v605_v22 }
 0x200   : > { %1118 = vst [vmem:[%s1515_s23 + $0xeb8] sm:$0xff] %v606_v23 }
 0x201   : > { %1119 = vst [vmem:[%s1515_s23 + $0xec0] sm:$0xff] %v607_v24 }
 0x202   : > { %1120 = vst [vmem:[%s1515_s23 + $0xec8] sm:$0xff] %v608_v25 }
 0x203   : > { %1121 = vst [vmem:[%s1515_s23 + $0xed0] sm:$0xff] %v609_v26 }
 0x204   : > { %1122 = vst [vmem:[%s1515_s23 + $0xed8] sm:$0xff] %v610_v27 }
 0x205   : > { %1123 = vst [vmem:[%s1515_s23 + $0xee0] sm:$0xff] %v611_v28 }
 0x206   : > { %1124 = vst [vmem:[%s1515_s23 + $0xee8] sm:$0xff] %v612_v29 }
 0x207   : > { %1125 = vst [vmem:[%s1515_s23 + $0xef0] sm:$0xff] %v613_v30 }
 0x208   : > { %1126 = vst [vmem:[%s1515_s23 + $0xef8] sm:$0xff] %v614_v31 }
 0x209   : > { %1127 = vst [vmem:[%s1515_s23 + $0xf00] sm:$0xff] %v615_v32 }
 0x20a   : > { %1128 = vst [vmem:[%s1515_s23 + $0xf08] sm:$0xff] %v616_v33 }
 0x20b   : > { %1129 = vst [vmem:[%s1515_s23 + $0xf10] sm:$0xff] %v617_v34 }
 0x20c   : > { %1130 = vst [vmem:[%s1515_s23 + $0xf18] sm:$0xff] %v618_v35 }
 0x20d   : > { %1131 = vst [vmem:[%s1515_s23 + $0xf20] sm:$0xff] %v619_v36 }
 0x20e   : > { %1132 = vst [vmem:[%s1515_s23 + $0xf28] sm:$0xff] %v620_v37 }
 0x20f   : > { %1133 = vst [vmem:[%s1515_s23 + $0xf30] sm:$0xff] %v621_v38 }
 0x210   : > { %1134 = vst [vmem:[%s1515_s23 + $0xf38] sm:$0xff] %v622_v39 }
 0x211   : > { %1135 = vst [vmem:[%s1515_s23 + $0xf40] sm:$0xff] %v623_v40 }
 0x212   : > { %1136 = vst [vmem:[%s1515_s23 + $0xf48] sm:$0xff] %v624_v41 }
 0x213   : > { %1137 = vst [vmem:[%s1515_s23 + $0xf50] sm:$0xff] %v625_v42 }
 0x214   : > { %1138 = vst [vmem:[%s1515_s23 + $0xf58] sm:$0xff] %v626_v43 }
 0x215   : > { %1139 = vst [vmem:[%s1515_s23 + $0xf60] sm:$0xff] %v627_v44 }
 0x216   : > { %1140 = vst [vmem:[%s1515_s23 + $0xf68] sm:$0xff] %v628_v45 }
 0x217   : > { %1141 = vst [vmem:[%s1515_s23 + $0xf70] sm:$0xff] %v629_v46 }
 0x218   : > { %1142 = vst [vmem:[%s1515_s23 + $0xf78] sm:$0xff] %v630_v47 }
 0x219   : > { %1143 = vst [vmem:[%s1515_s23 + $0xf80] sm:$0xff] %v631_v48 }
 0x21a   : > { %1144 = vst [vmem:[%s1515_s23 + $0xf88] sm:$0xff] %v632_v49 }
 0x21b   : > { %1145 = vst [vmem:[%s1515_s23 + $0xf90] sm:$0xff] %v633_v50 }
 0x21c   : > { %1146 = vst [vmem:[%s1515_s23 + $0xf98] sm:$0xff] %v634_v51 }
 0x21d   : > { %1147 = vst [vmem:[%s1515_s23 + $0xfa0] sm:$0xff] %v635_v52 }
 0x21e   : > { %1148 = vst [vmem:[%s1515_s23 + $0xfa8] sm:$0xff] %v636_v53 }
 0x21f   : > { %1149 = vst [vmem:[%s1515_s23 + $0xfb0] sm:$0xff] %v637_v54 }
 0x220   : > { %1150 = vst [vmem:[%s1515_s23 + $0xfb8] sm:$0xff] %v638_v55 }
 0x221   : > { %1151 = vst [vmem:[%s1515_s23 + $0xfc0] sm:$0xff] %v639_v56 }
 0x222   : > { %1152 = vst [vmem:[%s1515_s23 + $0xfc8] sm:$0xff] %v640_v57 }
 0x223   : > { %1153 = vst [vmem:[%s1515_s23 + $0xfd0] sm:$0xff] %v641_v58 }
 0x224   : > { %1154 = vst [vmem:[%s1515_s23 + $0xfd8] sm:$0xff] %v642_v59 }
 0x225   : > { %1155 = vst [vmem:[%s1515_s23 + $0xfe0] sm:$0xff] %v643_v60 }
 0x226   : > { %1156 = vst [vmem:[%s1515_s23 + $0xfe8] sm:$0xff] %v644_v61 }
 0x227   : > { %1157 = vst [vmem:[%s1515_s23 + $0xff0] sm:$0xff] %v645_v62 }
 0x228   : > { %1158 = vst [vmem:[%s1515_s23 + $0xff8] sm:$0xff] %v646_v63 }
 0x229   : > { %1365 = shalt.err (!%p1362_p4)
}
 0x22a   : > { %1264 = dma.vmem_to_hbm [thread:$0]  (%p1466_p11), %s1174_s10, 65536, %s1176_s27, %s1160_s28  }
 0x22b PF: > { %s1187_s13 = sand.u32 1, %s1392_s6   ;;  %p2579_p7 = scmp.ge.s32.totalorder %s1404_s9, 2 }
 0x22c   : > { %s1188_s14 = scalar_lea.sflag [#allocation4], %s1187_s13 }
 0x22d   : > { %p1271_p5 = pnand %p2579_p7, %p1470_p12 }
 0x22f   : > { %p1272_p8 = pneg %p1271_p5 }
 0x231   : > { %1387 = dma.done.wait (%p1272_p8), %s1188_s14, 65536  }
 0x232   : > { %1389 = vsyncadd (%p1272_p8), %s1188_s14, 4294901760  ;;  %p14_p10 = scmp.ge.s32.totalorder %s1441_s12, 4   ;;  %s2580_s6 = smov %s1396_s7 }
 0x233   : > { %s2581_s7 = smov %s1400_s8  ;;  %s2582_s8 = smov %s1453_s15 }
 0x234   : > { %s2583_s9 = smov %s1441_s12  ;;  %16 = sbr.rel (!%p14_p10) target bundleno = 5 (0x5), region = 69 }
 0x239   :  { %1194 = vsyncpa [#allocation3], 1 }
 0x23a   :  { %1196 = vsyncpa [#allocation3 + $0x1], 1 }
 0x23b   :  { %1197 = vsyncpa [#allocation4], 1 }
 0x23c   :  { %1199 = vsyncpa [#allocation4 + $0x1], 1 }

</bundles_post_ra>
